<compile_context>
chip_gen: v6e
topology: v6e:2x2x1
jax: 0.10.0
libtpu: 0.0.40
codegen_flags: <defaults>
</compile_context>

<pallas_src>
import jax
import jax.numpy as jnp
from jax.experimental import pallas as pl
from jax.experimental.pallas import tpu as pltpu


def _make_hybrid_kernel(B, Cin, Cout, H, W):
    """Build the fused kernel plus the shape of its padded-image VMEM scratch."""
    Wp = W + 2                                          # SAME-padded width
    Mtap = pl.cdiv(H * Wp, 128) * 128                   # lane-aligned tap/dot width
    Lstrip = pl.cdiv(Mtap + 2 * Wp + 2, 128) * 128      # room for the largest tap shift
    offsets = [dy * Wp + dx for dy in range(3) for dx in range(3)]

    def kernel(xc_ref, wc_ref, bc_ref, xl_ref, wl_ref, bl_ref,
               oc_ref, ol_ref, strip_ref):
        # ---- crossattn path: batch-folded Linear, one MXU dot over (B*T, Din) ----
        y = jnp.dot(xl_ref[...], wl_ref[...], preferred_element_type=jnp.float32)
        ol_ref[...] = (y + bl_ref[...]).astype(ol_ref.dtype)

        # ---- concat path: 3x3 SAME conv as a tap-matrix matmul on the MXU --------
        # The scratch holds one batch element's zero-padded image, flattened
        # row-major with width Wp.  Zero it once: the pad lanes are identical for
        # every batch element and the valid-row lanes are fully overwritten below.
        strip_ref[...] = jnp.zeros_like(strip_ref)
        wc = wc_ref[...]                       # (Cout, 9*Cin), col k = (dy*3+dx)*Cin + ci
        bc = bc_ref[...]                       # (Cout, 1)
        for b in range(B):                     # B is tiny here; static unroll
            xcb = xc_ref[b]                    # (Cin, H*W), one dense load
            # In-kernel padding: input row h lands at flat offset (h+1)*Wp + 1.
            for h in range(H):
                strip_ref[:, pl.ds((h + 1) * Wp + 1, W)] = xcb[:, h * W:(h + 1) * W]
            strip = strip_ref[...]             # (Cin, Lstrip)
            # Tap matrix: row t*Cin + ci is the strip shifted by off_t = dy*Wp + dx,
            # so column m = h*Wp + w holds X_pad[ci, h+dy, w+dx].  One MXU pass.
            taps = jnp.concatenate([strip[:, off:off + Mtap] for off in offsets],
                                   axis=0)     # (9*Cin, Mtap)
            res = jnp.dot(wc, taps, preferred_element_type=jnp.float32) + bc  # (Cout, Mtap)
            # Compact the padded-stride rows (stride Wp) into the dense (Cout, H*W)
            # output block.  Columns w in {W, W+1} of `res` come from wrapped taps and
            # are garbage — they are dropped here; never consume `res` beyond this.
            for h in range(H):
                oc_ref[b, :, pl.ds(h * W, W)] = (
                    res[:, h * Wp:h * Wp + W].astype(oc_ref.dtype))

    return kernel, (Cin, Lstrip)


@jax.jit
def hybrid_forward(params, c_concat, c_crossattn):
    conv_w, conv_b = params["conv_w"], params["conv_b"]   # (Cout,Cin,3,3), (Cout,)
    lin_w, lin_b = params["lin_w"], params["lin_b"]       # (Din,Dout), (Dout,)

    B, Cin, H, W = c_concat.shape
    Cout = conv_w.shape[0]
    _, T, Din = c_crossattn.shape
    Dout = lin_w.shape[1]

    # Only free (contiguous) reshapes outside the kernel: padding, im2col and output
    # compaction all happen inside the single pallas_call.
    xc = c_concat.reshape(B, Cin, H * W)
    xl = c_crossattn.reshape(B * T, Din)

    # conv weight (Cout,Cin,3,3) -> (Cout, 9*Cin) with column k = (dy*3+dx)*Cin + ci
    wc = jnp.transpose(conv_w, (0, 2, 3, 1)).reshape(Cout, 9 * Cin)
    bc = conv_b.reshape(Cout, 1)
    bl = lin_b.reshape(1, Dout)

    kernel, strip_shape = _make_hybrid_kernel(B, Cin, Cout, H, W)

    # Single kernel invocation (no grid): at B=2 the per-grid-step overhead would
    # exceed the payload and v5e/v6e would run the steps serially anyway.
    # TODO(synk): for large production B, reintroduce grid=(B,) with
    # dimension_semantics=("parallel",) so v7x's two TensorCores split the batch.
    conv_flat, lin_flat = pl.pallas_call(
        kernel,
        out_shape=(
            jax.ShapeDtypeStruct((B, Cout, H * W), jnp.float32),   # lane-dense conv out
            jax.ShapeDtypeStruct((B * T, Dout), jnp.float32),      # batch-folded linear
        ),
        scratch_shapes=[pltpu.VMEM(strip_shape, jnp.float32)],
    )(xc, wc, bc, xl, lin_w, bl)

    return {"c_concat": [conv_flat.reshape(B, Cout, H, W)],
            "c_crossattn": [lin_flat.reshape(B, T, Dout)]}


class HybridConditioner:
    """Pallas TPU port of HybridConditioner with synthetic sub-conditioners."""

    def __init__(self, params):
        self.params = dict(params)

    def __call__(self, c_concat, c_crossattn):
        return hybrid_forward(self.params, c_concat, c_crossattn)


if __name__ == "__main__":
    key = jax.random.PRNGKey(0)
    k_cc, k_ca, k_cw, k_cb, k_lw, k_lb = jax.random.split(key, 6)

    # small shapes: batch=2, channels 4 -> 8, spatial 16, seq=8, hidden 32 -> 64
    B, Cin, Cout, H, W = 2, 4, 8, 16, 16
    T, Din, Dout = 8, 32, 64

    c_concat = jax.random.normal(k_cc, (B, Cin, H, W), dtype=jnp.float32)
    c_crossattn = jax.random.normal(k_ca, (B, T, Din), dtype=jnp.float32)

    # deterministic synthetic parameters (PyTorch-like init scales)
    conv_w = jax.random.normal(k_cw, (Cout, Cin, 3, 3), jnp.float32) * (1.0 / (Cin * 9) ** 0.5)
    conv_b = jax.random.normal(k_cb, (Cout,), jnp.float32) * 0.01
    lin_w = jax.random.normal(k_lw, (Din, Dout), jnp.float32) * (1.0 / Din ** 0.5)
    lin_b = jax.random.normal(k_lb, (Dout,), jnp.float32) * 0.01

    model = HybridConditioner(dict(conv_w=conv_w, conv_b=conv_b,
                                   lin_w=lin_w, lin_b=lin_b))

    out = model(c_concat, c_crossattn)
    jax.block_until_ready(out["c_concat"][0])
    jax.block_until_ready(out["c_crossattn"][0])

    # sanity-check against pure-JAX references
    ref_conv = jax.lax.conv_general_dilated(
        c_concat, conv_w, window_strides=(1, 1), padding="SAME",
        dimension_numbers=("NCHW", "OIHW", "NCHW")) + conv_b[None, :, None, None]
    ref_lin = jnp.einsum("btd,do->bto", c_crossattn, lin_w) + lin_b

    assert out["c_concat"][0].shape == (B, Cout, H, W)
    assert out["c_crossattn"][0].shape == (B, T, Dout)
    assert jnp.allclose(out["c_concat"][0], ref_conv, atol=1e-4), "conv mismatch"
    assert jnp.allclose(out["c_crossattn"][0], ref_lin, atol=1e-4), "linear mismatch"

    print("KERNEL_OK")
</pallas_src>

<mosaic_0001>
module attributes {stable_mosaic.version = 11 : i64} {
  func.func @kernel(%arg0: memref<2x4x256xf32, #tpu.memory_space<vmem>>, %arg1: memref<8x36xf32, #tpu.memory_space<vmem>>, %arg2: memref<8x1xf32, #tpu.memory_space<vmem>>, %arg3: memref<16x32xf32, #tpu.memory_space<vmem>>, %arg4: memref<32x64xf32, #tpu.memory_space<vmem>>, %arg5: memref<1x64xf32, #tpu.memory_space<vmem>>, %arg6: memref<2x8x256xf32, #tpu.memory_space<vmem>>, %arg7: memref<16x64xf32, #tpu.memory_space<vmem>>, %arg8: memref<4x512xf32, #tpu.memory_space<vmem>>) attributes {dimension_semantics = [], scalar_prefetch = 0 : i64, scratch_operands = 1 : i64, tpu.core_type = #tpu.core_type<tc>} {
    %c0 = arith.constant 0 : index
    %c0_0 = arith.constant 0 : index
    %0 = vector.load %arg3[%c0, %c0_0] : memref<16x32xf32, #tpu.memory_space<vmem>>, vector<16x32xf32>
    %c0_1 = arith.constant 0 : index
    %c0_2 = arith.constant 0 : index
    %1 = vector.load %arg4[%c0_1, %c0_2] : memref<32x64xf32, #tpu.memory_space<vmem>>, vector<32x64xf32>
    %cst = arith.constant dense<0.000000e+00> : vector<16x64xf32>
    %2 = tpu.matmul %0, %1, %cst {dimension_numbers = #tpu.dot_dimension_numbers<[1], [0], [0], [1], [0, 0, 1, 1], [], []>} : vector<16x32xf32>, vector<32x64xf32>, vector<16x64xf32> -> vector<16x64xf32>
    %c0_3 = arith.constant 0 : index
    %c0_4 = arith.constant 0 : index
    %3 = vector.load %arg5[%c0_3, %c0_4] : memref<1x64xf32, #tpu.memory_space<vmem>>, vector<1x64xf32>
    %4 = vector.broadcast %3 : vector<1x64xf32> to vector<16x64xf32>
    %5 = arith.addf %2, %4 : vector<16x64xf32>
    %c0_5 = arith.constant 0 : index
    %c0_6 = arith.constant 0 : index
    %6 = vector.load %arg7[%c0_5, %c0_6] : memref<16x64xf32, #tpu.memory_space<vmem>>, vector<16x64xf32>
    tpu.vector_store %arg7[%c0_5, %c0_6], %5 {strides = array<i32>} : memref<16x64xf32, #tpu.memory_space<vmem>>, vector<16x64xf32>,
    %cst_7 = arith.constant 0.000000e+00 : f32
    %7 = vector.broadcast %cst_7 : f32 to vector<4x512xf32>
    %c0_8 = arith.constant 0 : index
    %c0_9 = arith.constant 0 : index
    %8 = vector.load %arg8[%c0_8, %c0_9] : memref<4x512xf32, #tpu.memory_space<vmem>>, vector<4x512xf32>
    tpu.vector_store %arg8[%c0_8, %c0_9], %7 {strides = array<i32>} : memref<4x512xf32, #tpu.memory_space<vmem>>, vector<4x512xf32>,
    %c0_10 = arith.constant 0 : index
    %c0_11 = arith.constant 0 : index
    %9 = vector.load %arg1[%c0_10, %c0_11] : memref<8x36xf32, #tpu.memory_space<vmem>>, vector<8x36xf32>
    %c0_12 = arith.constant 0 : index
    %c0_13 = arith.constant 0 : index
    %10 = vector.load %arg2[%c0_12, %c0_13] : memref<8x1xf32, #tpu.memory_space<vmem>>, vector<8x1xf32>
    %c0_14 = arith.constant 0 : index
    %c0_15 = arith.constant 0 : index
    %c0_16 = arith.constant 0 : index
    %11 = vector.load %arg0[%c0_14, %c0_15, %c0_16] : memref<2x4x256xf32, #tpu.memory_space<vmem>>, vector<1x4x256xf32>
    %12 = vector.shape_cast %11 : vector<1x4x256xf32> to vector<4x256xf32>
    %13 = vector.extract_strided_slice %12 {offsets = [0, 0], sizes = [4, 16], strides = [1, 1]} : vector<4x256xf32> to vector<4x16xf32>
    %c0_17 = arith.constant 0 : index
    %c19 = arith.constant 19 : index
    %14 = vector.load %arg8[%c0_17, %c19] : memref<4x512xf32, #tpu.memory_space<vmem>>, vector<4x16xf32>
    tpu.vector_store %arg8[%c0_17, %c19], %13 {strides = array<i32>} : memref<4x512xf32, #tpu.memory_space<vmem>>, vector<4x16xf32>,
    %15 = vector.extract_strided_slice %12 {offsets = [0, 16], sizes = [4, 16], strides = [1, 1]} : vector<4x256xf32> to vector<4x16xf32>
    %c0_18 = arith.constant 0 : index
    %c37 = arith.constant 37 : index
    %16 = vector.load %arg8[%c0_18, %c37] : memref<4x512xf32, #tpu.memory_space<vmem>>, vector<4x16xf32>
    tpu.vector_store %arg8[%c0_18, %c37], %15 {strides = array<i32>} : memref<4x512xf32, #tpu.memory_space<vmem>>, vector<4x16xf32>,
    %17 = vector.extract_strided_slice %12 {offsets = [0, 32], sizes = [4, 16], strides = [1, 1]} : vector<4x256xf32> to vector<4x16xf32>
    %c0_19 = arith.constant 0 : index
    %c55 = arith.constant 55 : index
    %18 = vector.load %arg8[%c0_19, %c55] : memref<4x512xf32, #tpu.memory_space<vmem>>, vector<4x16xf32>
    tpu.vector_store %arg8[%c0_19, %c55], %17 {strides = array<i32>} : memref<4x512xf32, #tpu.memory_space<vmem>>, vector<4x16xf32>,
    %19 = vector.extract_strided_slice %12 {offsets = [0, 48], sizes = [4, 16], strides = [1, 1]} : vector<4x256xf32> to vector<4x16xf32>
    %c0_20 = arith.constant 0 : index
    %c73 = arith.constant 73 : index
    %20 = vector.load %arg8[%c0_20, %c73] : memref<4x512xf32, #tpu.memory_space<vmem>>, vector<4x16xf32>
    tpu.vector_store %arg8[%c0_20, %c73], %19 {strides = array<i32>} : memref<4x512xf32, #tpu.memory_space<vmem>>, vector<4x16xf32>,
    %21 = vector.extract_strided_slice %12 {offsets = [0, 64], sizes = [4, 16], strides = [1, 1]} : vector<4x256xf32> to vector<4x16xf32>
    %c0_21 = arith.constant 0 : index
    %c91 = arith.constant 91 : index
    %22 = vector.load %arg8[%c0_21, %c91] : memref<4x512xf32, #tpu.memory_space<vmem>>, vector<4x16xf32>
    tpu.vector_store %arg8[%c0_21, %c91], %21 {strides = array<i32>} : memref<4x512xf32, #tpu.memory_space<vmem>>, vector<4x16xf32>,
    %23 = vector.extract_strided_slice %12 {offsets = [0, 80], sizes = [4, 16], strides = [1, 1]} : vector<4x256xf32> to vector<4x16xf32>
    %c0_22 = arith.constant 0 : index
    %c109 = arith.constant 109 : index
    %24 = vector.load %arg8[%c0_22, %c109] : memref<4x512xf32, #tpu.memory_space<vmem>>, vector<4x16xf32>
    tpu.vector_store %arg8[%c0_22, %c109], %23 {strides = array<i32>} : memref<4x512xf32, #tpu.memory_space<vmem>>, vector<4x16xf32>,
    %25 = vector.extract_strided_slice %12 {offsets = [0, 96], sizes = [4, 16], strides = [1, 1]} : vector<4x256xf32> to vector<4x16xf32>
    %c0_23 = arith.constant 0 : index
    %c127 = arith.constant 127 : index
    %26 = vector.load %arg8[%c0_23, %c127] : memref<4x512xf32, #tpu.memory_space<vmem>>, vector<4x16xf32>
    tpu.vector_store %arg8[%c0_23, %c127], %25 {strides = array<i32>} : memref<4x512xf32, #tpu.memory_space<vmem>>, vector<4x16xf32>,
    %27 = vector.extract_strided_slice %12 {offsets = [0, 112], sizes = [4, 16], strides = [1, 1]} : vector<4x256xf32> to vector<4x16xf32>
    %c0_24 = arith.constant 0 : index
    %c145 = arith.constant 145 : index
    %28 = vector.load %arg8[%c0_24, %c145] : memref<4x512xf32, #tpu.memory_space<vmem>>, vector<4x16xf32>
    tpu.vector_store %arg8[%c0_24, %c145], %27 {strides = array<i32>} : memref<4x512xf32, #tpu.memory_space<vmem>>, vector<4x16xf32>,
    %29 = vector.extract_strided_slice %12 {offsets = [0, 128], sizes = [4, 16], strides = [1, 1]} : vector<4x256xf32> to vector<4x16xf32>
    %c0_25 = arith.constant 0 : index
    %c163 = arith.constant 163 : index
    %30 = vector.load %arg8[%c0_25, %c163] : memref<4x512xf32, #tpu.memory_space<vmem>>, vector<4x16xf32>
    tpu.vector_store %arg8[%c0_25, %c163], %29 {strides = array<i32>} : memref<4x512xf32, #tpu.memory_space<vmem>>, vector<4x16xf32>,
    %31 = vector.extract_strided_slice %12 {offsets = [0, 144], sizes = [4, 16], strides = [1, 1]} : vector<4x256xf32> to vector<4x16xf32>
    %c0_26 = arith.constant 0 : index
    %c181 = arith.constant 181 : index
    %32 = vector.load %arg8[%c0_26, %c181] : memref<4x512xf32, #tpu.memory_space<vmem>>, vector<4x16xf32>
    tpu.vector_store %arg8[%c0_26, %c181], %31 {strides = array<i32>} : memref<4x512xf32, #tpu.memory_space<vmem>>, vector<4x16xf32>,
    %33 = vector.extract_strided_slice %12 {offsets = [0, 160], sizes = [4, 16], strides = [1, 1]} : vector<4x256xf32> to vector<4x16xf32>
    %c0_27 = arith.constant 0 : index
    %c199 = arith.constant 199 : index
    %34 = vector.load %arg8[%c0_27, %c199] : memref<4x512xf32, #tpu.memory_space<vmem>>, vector<4x16xf32>
    tpu.vector_store %arg8[%c0_27, %c199], %33 {strides = array<i32>} : memref<4x512xf32, #tpu.memory_space<vmem>>, vector<4x16xf32>,
    %35 = vector.extract_strided_slice %12 {offsets = [0, 176], sizes = [4, 16], strides = [1, 1]} : vector<4x256xf32> to vector<4x16xf32>
    %c0_28 = arith.constant 0 : index
    %c217 = arith.constant 217 : index
    %36 = vector.load %arg8[%c0_28, %c217] : memref<4x512xf32, #tpu.memory_space<vmem>>, vector<4x16xf32>
    tpu.vector_store %arg8[%c0_28, %c217], %35 {strides = array<i32>} : memref<4x512xf32, #tpu.memory_space<vmem>>, vector<4x16xf32>,
    %37 = vector.extract_strided_slice %12 {offsets = [0, 192], sizes = [4, 16], strides = [1, 1]} : vector<4x256xf32> to vector<4x16xf32>
    %c0_29 = arith.constant 0 : index
    %c235 = arith.constant 235 : index
    %38 = vector.load %arg8[%c0_29, %c235] : memref<4x512xf32, #tpu.memory_space<vmem>>, vector<4x16xf32>
    tpu.vector_store %arg8[%c0_29, %c235], %37 {strides = array<i32>} : memref<4x512xf32, #tpu.memory_space<vmem>>, vector<4x16xf32>,
    %39 = vector.extract_strided_slice %12 {offsets = [0, 208], sizes = [4, 16], strides = [1, 1]} : vector<4x256xf32> to vector<4x16xf32>
    %c0_30 = arith.constant 0 : index
    %c253 = arith.constant 253 : index
    %40 = vector.load %arg8[%c0_30, %c253] : memref<4x512xf32, #tpu.memory_space<vmem>>, vector<4x16xf32>
    tpu.vector_store %arg8[%c0_30, %c253], %39 {strides = array<i32>} : memref<4x512xf32, #tpu.memory_space<vmem>>, vector<4x16xf32>,
    %41 = vector.extract_strided_slice %12 {offsets = [0, 224], sizes = [4, 16], strides = [1, 1]} : vector<4x256xf32> to vector<4x16xf32>
    %c0_31 = arith.constant 0 : index
    %c271 = arith.constant 271 : index
    %42 = vector.load %arg8[%c0_31, %c271] : memref<4x512xf32, #tpu.memory_space<vmem>>, vector<4x16xf32>
    tpu.vector_store %arg8[%c0_31, %c271], %41 {strides = array<i32>} : memref<4x512xf32, #tpu.memory_space<vmem>>, vector<4x16xf32>,
    %43 = vector.extract_strided_slice %12 {offsets = [0, 240], sizes = [4, 16], strides = [1, 1]} : vector<4x256xf32> to vector<4x16xf32>
    %c0_32 = arith.constant 0 : index
    %c289 = arith.constant 289 : index
    %44 = vector.load %arg8[%c0_32, %c289] : memref<4x512xf32, #tpu.memory_space<vmem>>, vector<4x16xf32>
    tpu.vector_store %arg8[%c0_32, %c289], %43 {strides = array<i32>} : memref<4x512xf32, #tpu.memory_space<vmem>>, vector<4x16xf32>,
    %c0_33 = arith.constant 0 : index
    %c0_34 = arith.constant 0 : index
    %45 = vector.load %arg8[%c0_33, %c0_34] : memref<4x512xf32, #tpu.memory_space<vmem>>, vector<4x512xf32>
    %46 = vector.extract_strided_slice %45 {offsets = [0, 0], sizes = [4, 384], strides = [1, 1]} : vector<4x512xf32> to vector<4x384xf32>
    %47 = vector.extract_strided_slice %45 {offsets = [0, 1], sizes = [4, 384], strides = [1, 1]} : vector<4x512xf32> to vector<4x384xf32>
    %48 = vector.extract_strided_slice %45 {offsets = [0, 2], sizes = [4, 384], strides = [1, 1]} : vector<4x512xf32> to vector<4x384xf32>
    %49 = vector.extract_strided_slice %45 {offsets = [0, 18], sizes = [4, 384], strides = [1, 1]} : vector<4x512xf32> to vector<4x384xf32>
    %50 = vector.extract_strided_slice %45 {offsets = [0, 19], sizes = [4, 384], strides = [1, 1]} : vector<4x512xf32> to vector<4x384xf32>
    %51 = vector.extract_strided_slice %45 {offsets = [0, 20], sizes = [4, 384], strides = [1, 1]} : vector<4x512xf32> to vector<4x384xf32>
    %52 = vector.extract_strided_slice %45 {offsets = [0, 36], sizes = [4, 384], strides = [1, 1]} : vector<4x512xf32> to vector<4x384xf32>
    %53 = vector.extract_strided_slice %45 {offsets = [0, 37], sizes = [4, 384], strides = [1, 1]} : vector<4x512xf32> to vector<4x384xf32>
    %54 = vector.extract_strided_slice %45 {offsets = [0, 38], sizes = [4, 384], strides = [1, 1]} : vector<4x512xf32> to vector<4x384xf32>
    %55 = tpu.concatenate %46, %47, %48, %49, %50, %51, %52, %53, %54 in 0 : vector<4x384xf32>, vector<4x384xf32>, vector<4x384xf32>, vector<4x384xf32>, vector<4x384xf32>, vector<4x384xf32>, vector<4x384xf32>, vector<4x384xf32>, vector<4x384xf32> -> vector<36x384xf32>
    %cst_35 = arith.constant dense<0.000000e+00> : vector<8x384xf32>
    %56 = tpu.matmul %9, %55, %cst_35 {dimension_numbers = #tpu.dot_dimension_numbers<[1], [0], [0], [1], [0, 0, 1, 1], [], []>} : vector<8x36xf32>, vector<36x384xf32>, vector<8x384xf32> -> vector<8x384xf32>
    %57 = vector.broadcast %10 : vector<8x1xf32> to vector<8x384xf32>
    %58 = arith.addf %56, %57 : vector<8x384xf32>
    %59 = vector.extract_strided_slice %58 {offsets = [0, 0], sizes = [8, 16], strides = [1, 1]} : vector<8x384xf32> to vector<8x16xf32>
    %c0_36 = arith.constant 0 : index
    %c0_37 = arith.constant 0 : index
    %c0_38 = arith.constant 0 : index
    %60 = vector.load %arg6[%c0_36, %c0_37, %c0_38] : memref<2x8x256xf32, #tpu.memory_space<vmem>>, vector<1x8x16xf32>
    %61 = vector.shape_cast %60 : vector<1x8x16xf32> to vector<8x16xf32>
    %62 = vector.shape_cast %59 : vector<8x16xf32> to vector<1x8x16xf32>
    tpu.vector_store %arg6[%c0_36, %c0_37, %c0_38], %62 {strides = array<i32>} : memref<2x8x256xf32, #tpu.memory_space<vmem>>, vector<1x8x16xf32>,
    %63 = vector.extract_strided_slice %58 {offsets = [0, 18], sizes = [8, 16], strides = [1, 1]} : vector<8x384xf32> to vector<8x16xf32>
    %c0_39 = arith.constant 0 : index
    %c0_40 = arith.constant 0 : index
    %c16 = arith.constant 16 : index
    %64 = vector.load %arg6[%c0_39, %c0_40, %c16] : memref<2x8x256xf32, #tpu.memory_space<vmem>>, vector<1x8x16xf32>
    %65 = vector.shape_cast %64 : vector<1x8x16xf32> to vector<8x16xf32>
    %66 = vector.shape_cast %63 : vector<8x16xf32> to vector<1x8x16xf32>
    tpu.vector_store %arg6[%c0_39, %c0_40, %c16], %66 {strides = array<i32>} : memref<2x8x256xf32, #tpu.memory_space<vmem>>, vector<1x8x16xf32>,
    %67 = vector.extract_strided_slice %58 {offsets = [0, 36], sizes = [8, 16], strides = [1, 1]} : vector<8x384xf32> to vector<8x16xf32>
    %c0_41 = arith.constant 0 : index
    %c0_42 = arith.constant 0 : index
    %c32 = arith.constant 32 : index
    %68 = vector.load %arg6[%c0_41, %c0_42, %c32] : memref<2x8x256xf32, #tpu.memory_space<vmem>>, vector<1x8x16xf32>
    %69 = vector.shape_cast %68 : vector<1x8x16xf32> to vector<8x16xf32>
    %70 = vector.shape_cast %67 : vector<8x16xf32> to vector<1x8x16xf32>
    tpu.vector_store %arg6[%c0_41, %c0_42, %c32], %70 {strides = array<i32>} : memref<2x8x256xf32, #tpu.memory_space<vmem>>, vector<1x8x16xf32>,
    %71 = vector.extract_strided_slice %58 {offsets = [0, 54], sizes = [8, 16], strides = [1, 1]} : vector<8x384xf32> to vector<8x16xf32>
    %c0_43 = arith.constant 0 : index
    %c0_44 = arith.constant 0 : index
    %c48 = arith.constant 48 : index
    %72 = vector.load %arg6[%c0_43, %c0_44, %c48] : memref<2x8x256xf32, #tpu.memory_space<vmem>>, vector<1x8x16xf32>
    %73 = vector.shape_cast %72 : vector<1x8x16xf32> to vector<8x16xf32>
    %74 = vector.shape_cast %71 : vector<8x16xf32> to vector<1x8x16xf32>
    tpu.vector_store %arg6[%c0_43, %c0_44, %c48], %74 {strides = array<i32>} : memref<2x8x256xf32, #tpu.memory_space<vmem>>, vector<1x8x16xf32>,
    %75 = vector.extract_strided_slice %58 {offsets = [0, 72], sizes = [8, 16], strides = [1, 1]} : vector<8x384xf32> to vector<8x16xf32>
    %c0_45 = arith.constant 0 : index
    %c0_46 = arith.constant 0 : index
    %c64 = arith.constant 64 : index
    %76 = vector.load %arg6[%c0_45, %c0_46, %c64] : memref<2x8x256xf32, #tpu.memory_space<vmem>>, vector<1x8x16xf32>
    %77 = vector.shape_cast %76 : vector<1x8x16xf32> to vector<8x16xf32>
    %78 = vector.shape_cast %75 : vector<8x16xf32> to vector<1x8x16xf32>
    tpu.vector_store %arg6[%c0_45, %c0_46, %c64], %78 {strides = array<i32>} : memref<2x8x256xf32, #tpu.memory_space<vmem>>, vector<1x8x16xf32>,
    %79 = vector.extract_strided_slice %58 {offsets = [0, 90], sizes = [8, 16], strides = [1, 1]} : vector<8x384xf32> to vector<8x16xf32>
    %c0_47 = arith.constant 0 : index
    %c0_48 = arith.constant 0 : index
    %c80 = arith.constant 80 : index
    %80 = vector.load %arg6[%c0_47, %c0_48, %c80] : memref<2x8x256xf32, #tpu.memory_space<vmem>>, vector<1x8x16xf32>
    %81 = vector.shape_cast %80 : vector<1x8x16xf32> to vector<8x16xf32>
    %82 = vector.shape_cast %79 : vector<8x16xf32> to vector<1x8x16xf32>
    tpu.vector_store %arg6[%c0_47, %c0_48, %c80], %82 {strides = array<i32>} : memref<2x8x256xf32, #tpu.memory_space<vmem>>, vector<1x8x16xf32>,
    %83 = vector.extract_strided_slice %58 {offsets = [0, 108], sizes = [8, 16], strides = [1, 1]} : vector<8x384xf32> to vector<8x16xf32>
    %c0_49 = arith.constant 0 : index
    %c0_50 = arith.constant 0 : index
    %c96 = arith.constant 96 : index
    %84 = vector.load %arg6[%c0_49, %c0_50, %c96] : memref<2x8x256xf32, #tpu.memory_space<vmem>>, vector<1x8x16xf32>
    %85 = vector.shape_cast %84 : vector<1x8x16xf32> to vector<8x16xf32>
    %86 = vector.shape_cast %83 : vector<8x16xf32> to vector<1x8x16xf32>
    tpu.vector_store %arg6[%c0_49, %c0_50, %c96], %86 {strides = array<i32>} : memref<2x8x256xf32, #tpu.memory_space<vmem>>, vector<1x8x16xf32>,
    %87 = vector.extract_strided_slice %58 {offsets = [0, 126], sizes = [8, 16], strides = [1, 1]} : vector<8x384xf32> to vector<8x16xf32>
    %c0_51 = arith.constant 0 : index
    %c0_52 = arith.constant 0 : index
    %c112 = arith.constant 112 : index
    %88 = vector.load %arg6[%c0_51, %c0_52, %c112] : memref<2x8x256xf32, #tpu.memory_space<vmem>>, vector<1x8x16xf32>
    %89 = vector.shape_cast %88 : vector<1x8x16xf32> to vector<8x16xf32>
    %90 = vector.shape_cast %87 : vector<8x16xf32> to vector<1x8x16xf32>
    tpu.vector_store %arg6[%c0_51, %c0_52, %c112], %90 {strides = array<i32>} : memref<2x8x256xf32, #tpu.memory_space<vmem>>, vector<1x8x16xf32>,
    %91 = vector.extract_strided_slice %58 {offsets = [0, 144], sizes = [8, 16], strides = [1, 1]} : vector<8x384xf32> to vector<8x16xf32>
    %c0_53 = arith.constant 0 : index
    %c0_54 = arith.constant 0 : index
    %c128 = arith.constant 128 : index
    %92 = vector.load %arg6[%c0_53, %c0_54, %c128] : memref<2x8x256xf32, #tpu.memory_space<vmem>>, vector<1x8x16xf32>
    %93 = vector.shape_cast %92 : vector<1x8x16xf32> to vector<8x16xf32>
    %94 = vector.shape_cast %91 : vector<8x16xf32> to vector<1x8x16xf32>
    tpu.vector_store %arg6[%c0_53, %c0_54, %c128], %94 {strides = array<i32>} : memref<2x8x256xf32, #tpu.memory_space<vmem>>, vector<1x8x16xf32>,
    %95 = vector.extract_strided_slice %58 {offsets = [0, 162], sizes = [8, 16], strides = [1, 1]} : vector<8x384xf32> to vector<8x16xf32>
    %c0_55 = arith.constant 0 : index
    %c0_56 = arith.constant 0 : index
    %c144 = arith.constant 144 : index
    %96 = vector.load %arg6[%c0_55, %c0_56, %c144] : memref<2x8x256xf32, #tpu.memory_space<vmem>>, vector<1x8x16xf32>
    %97 = vector.shape_cast %96 : vector<1x8x16xf32> to vector<8x16xf32>
    %98 = vector.shape_cast %95 : vector<8x16xf32> to vector<1x8x16xf32>
    tpu.vector_store %arg6[%c0_55, %c0_56, %c144], %98 {strides = array<i32>} : memref<2x8x256xf32, #tpu.memory_space<vmem>>, vector<1x8x16xf32>,
    %99 = vector.extract_strided_slice %58 {offsets = [0, 180], sizes = [8, 16], strides = [1, 1]} : vector<8x384xf32> to vector<8x16xf32>
    %c0_57 = arith.constant 0 : index
    %c0_58 = arith.constant 0 : index
    %c160 = arith.constant 160 : index
    %100 = vector.load %arg6[%c0_57, %c0_58, %c160] : memref<2x8x256xf32, #tpu.memory_space<vmem>>, vector<1x8x16xf32>
    %101 = vector.shape_cast %100 : vector<1x8x16xf32> to vector<8x16xf32>
    %102 = vector.shape_cast %99 : vector<8x16xf32> to vector<1x8x16xf32>
    tpu.vector_store %arg6[%c0_57, %c0_58, %c160], %102 {strides = array<i32>} : memref<2x8x256xf32, #tpu.memory_space<vmem>>, vector<1x8x16xf32>,
    %103 = vector.extract_strided_slice %58 {offsets = [0, 198], sizes = [8, 16], strides = [1, 1]} : vector<8x384xf32> to vector<8x16xf32>
    %c0_59 = arith.constant 0 : index
    %c0_60 = arith.constant 0 : index
    %c176 = arith.constant 176 : index
    %104 = vector.load %arg6[%c0_59, %c0_60, %c176] : memref<2x8x256xf32, #tpu.memory_space<vmem>>, vector<1x8x16xf32>
    %105 = vector.shape_cast %104 : vector<1x8x16xf32> to vector<8x16xf32>
    %106 = vector.shape_cast %103 : vector<8x16xf32> to vector<1x8x16xf32>
    tpu.vector_store %arg6[%c0_59, %c0_60, %c176], %106 {strides = array<i32>} : memref<2x8x256xf32, #tpu.memory_space<vmem>>, vector<1x8x16xf32>,
    %107 = vector.extract_strided_slice %58 {offsets = [0, 216], sizes = [8, 16], strides = [1, 1]} : vector<8x384xf32> to vector<8x16xf32>
    %c0_61 = arith.constant 0 : index
    %c0_62 = arith.constant 0 : index
    %c192 = arith.constant 192 : index
    %108 = vector.load %arg6[%c0_61, %c0_62, %c192] : memref<2x8x256xf32, #tpu.memory_space<vmem>>, vector<1x8x16xf32>
    %109 = vector.shape_cast %108 : vector<1x8x16xf32> to vector<8x16xf32>
    %110 = vector.shape_cast %107 : vector<8x16xf32> to vector<1x8x16xf32>
    tpu.vector_store %arg6[%c0_61, %c0_62, %c192], %110 {strides = array<i32>} : memref<2x8x256xf32, #tpu.memory_space<vmem>>, vector<1x8x16xf32>,
    %111 = vector.extract_strided_slice %58 {offsets = [0, 234], sizes = [8, 16], strides = [1, 1]} : vector<8x384xf32> to vector<8x16xf32>
    %c0_63 = arith.constant 0 : index
    %c0_64 = arith.constant 0 : index
    %c208 = arith.constant 208 : index
    %112 = vector.load %arg6[%c0_63, %c0_64, %c208] : memref<2x8x256xf32, #tpu.memory_space<vmem>>, vector<1x8x16xf32>
    %113 = vector.shape_cast %112 : vector<1x8x16xf32> to vector<8x16xf32>
    %114 = vector.shape_cast %111 : vector<8x16xf32> to vector<1x8x16xf32>
    tpu.vector_store %arg6[%c0_63, %c0_64, %c208], %114 {strides = array<i32>} : memref<2x8x256xf32, #tpu.memory_space<vmem>>, vector<1x8x16xf32>,
    %115 = vector.extract_strided_slice %58 {offsets = [0, 252], sizes = [8, 16], strides = [1, 1]} : vector<8x384xf32> to vector<8x16xf32>
    %c0_65 = arith.constant 0 : index
    %c0_66 = arith.constant 0 : index
    %c224 = arith.constant 224 : index
    %116 = vector.load %arg6[%c0_65, %c0_66, %c224] : memref<2x8x256xf32, #tpu.memory_space<vmem>>, vector<1x8x16xf32>
    %117 = vector.shape_cast %116 : vector<1x8x16xf32> to vector<8x16xf32>
    %118 = vector.shape_cast %115 : vector<8x16xf32> to vector<1x8x16xf32>
    tpu.vector_store %arg6[%c0_65, %c0_66, %c224], %118 {strides = array<i32>} : memref<2x8x256xf32, #tpu.memory_space<vmem>>, vector<1x8x16xf32>,
    %119 = vector.extract_strided_slice %58 {offsets = [0, 270], sizes = [8, 16], strides = [1, 1]} : vector<8x384xf32> to vector<8x16xf32>
    %c0_67 = arith.constant 0 : index
    %c0_68 = arith.constant 0 : index
    %c240 = arith.constant 240 : index
    %120 = vector.load %arg6[%c0_67, %c0_68, %c240] : memref<2x8x256xf32, #tpu.memory_space<vmem>>, vector<1x8x16xf32>
    %121 = vector.shape_cast %120 : vector<1x8x16xf32> to vector<8x16xf32>
    %122 = vector.shape_cast %119 : vector<8x16xf32> to vector<1x8x16xf32>
    tpu.vector_store %arg6[%c0_67, %c0_68, %c240], %122 {strides = array<i32>} : memref<2x8x256xf32, #tpu.memory_space<vmem>>, vector<1x8x16xf32>,
    %c1 = arith.constant 1 : index
    %c0_69 = arith.constant 0 : index
    %c0_70 = arith.constant 0 : index
    %123 = vector.load %arg0[%c1, %c0_69, %c0_70] : memref<2x4x256xf32, #tpu.memory_space<vmem>>, vector<1x4x256xf32>
    %124 = vector.shape_cast %123 : vector<1x4x256xf32> to vector<4x256xf32>
    %125 = vector.extract_strided_slice %124 {offsets = [0, 0], sizes = [4, 16], strides = [1, 1]} : vector<4x256xf32> to vector<4x16xf32>
    %c0_71 = arith.constant 0 : index
    %c19_72 = arith.constant 19 : index
    %126 = vector.load %arg8[%c0_71, %c19_72] : memref<4x512xf32, #tpu.memory_space<vmem>>, vector<4x16xf32>
    tpu.vector_store %arg8[%c0_71, %c19_72], %125 {strides = array<i32>} : memref<4x512xf32, #tpu.memory_space<vmem>>, vector<4x16xf32>,
    %127 = vector.extract_strided_slice %124 {offsets = [0, 16], sizes = [4, 16], strides = [1, 1]} : vector<4x256xf32> to vector<4x16xf32>
    %c0_73 = arith.constant 0 : index
    %c37_74 = arith.constant 37 : index
    %128 = vector.load %arg8[%c0_73, %c37_74] : memref<4x512xf32, #tpu.memory_space<vmem>>, vector<4x16xf32>
    tpu.vector_store %arg8[%c0_73, %c37_74], %127 {strides = array<i32>} : memref<4x512xf32, #tpu.memory_space<vmem>>, vector<4x16xf32>,
    %129 = vector.extract_strided_slice %124 {offsets = [0, 32], sizes = [4, 16], strides = [1, 1]} : vector<4x256xf32> to vector<4x16xf32>
    %c0_75 = arith.constant 0 : index
    %c55_76 = arith.constant 55 : index
    %130 = vector.load %arg8[%c0_75, %c55_76] : memref<4x512xf32, #tpu.memory_space<vmem>>, vector<4x16xf32>
    tpu.vector_store %arg8[%c0_75, %c55_76], %129 {strides = array<i32>} : memref<4x512xf32, #tpu.memory_space<vmem>>, vector<4x16xf32>,
    %131 = vector.extract_strided_slice %124 {offsets = [0, 48], sizes = [4, 16], strides = [1, 1]} : vector<4x256xf32> to vector<4x16xf32>
    %c0_77 = arith.constant 0 : index
    %c73_78 = arith.constant 73 : index
    %132 = vector.load %arg8[%c0_77, %c73_78] : memref<4x512xf32, #tpu.memory_space<vmem>>, vector<4x16xf32>
    tpu.vector_store %arg8[%c0_77, %c73_78], %131 {strides = array<i32>} : memref<4x512xf32, #tpu.memory_space<vmem>>, vector<4x16xf32>,
    %133 = vector.extract_strided_slice %124 {offsets = [0, 64], sizes = [4, 16], strides = [1, 1]} : vector<4x256xf32> to vector<4x16xf32>
    %c0_79 = arith.constant 0 : index
    %c91_80 = arith.constant 91 : index
    %134 = vector.load %arg8[%c0_79, %c91_80] : memref<4x512xf32, #tpu.memory_space<vmem>>, vector<4x16xf32>
    tpu.vector_store %arg8[%c0_79, %c91_80], %133 {strides = array<i32>} : memref<4x512xf32, #tpu.memory_space<vmem>>, vector<4x16xf32>,
    %135 = vector.extract_strided_slice %124 {offsets = [0, 80], sizes = [4, 16], strides = [1, 1]} : vector<4x256xf32> to vector<4x16xf32>
    %c0_81 = arith.constant 0 : index
    %c109_82 = arith.constant 109 : index
    %136 = vector.load %arg8[%c0_81, %c109_82] : memref<4x512xf32, #tpu.memory_space<vmem>>, vector<4x16xf32>
    tpu.vector_store %arg8[%c0_81, %c109_82], %135 {strides = array<i32>} : memref<4x512xf32, #tpu.memory_space<vmem>>, vector<4x16xf32>,
    %137 = vector.extract_strided_slice %124 {offsets = [0, 96], sizes = [4, 16], strides = [1, 1]} : vector<4x256xf32> to vector<4x16xf32>
    %c0_83 = arith.constant 0 : index
    %c127_84 = arith.constant 127 : index
    %138 = vector.load %arg8[%c0_83, %c127_84] : memref<4x512xf32, #tpu.memory_space<vmem>>, vector<4x16xf32>
    tpu.vector_store %arg8[%c0_83, %c127_84], %137 {strides = array<i32>} : memref<4x512xf32, #tpu.memory_space<vmem>>, vector<4x16xf32>,
    %139 = vector.extract_strided_slice %124 {offsets = [0, 112], sizes = [4, 16], strides = [1, 1]} : vector<4x256xf32> to vector<4x16xf32>
    %c0_85 = arith.constant 0 : index
    %c145_86 = arith.constant 145 : index
    %140 = vector.load %arg8[%c0_85, %c145_86] : memref<4x512xf32, #tpu.memory_space<vmem>>, vector<4x16xf32>
    tpu.vector_store %arg8[%c0_85, %c145_86], %139 {strides = array<i32>} : memref<4x512xf32, #tpu.memory_space<vmem>>, vector<4x16xf32>,
    %141 = vector.extract_strided_slice %124 {offsets = [0, 128], sizes = [4, 16], strides = [1, 1]} : vector<4x256xf32> to vector<4x16xf32>
    %c0_87 = arith.constant 0 : index
    %c163_88 = arith.constant 163 : index
    %142 = vector.load %arg8[%c0_87, %c163_88] : memref<4x512xf32, #tpu.memory_space<vmem>>, vector<4x16xf32>
    tpu.vector_store %arg8[%c0_87, %c163_88], %141 {strides = array<i32>} : memref<4x512xf32, #tpu.memory_space<vmem>>, vector<4x16xf32>,
    %143 = vector.extract_strided_slice %124 {offsets = [0, 144], sizes = [4, 16], strides = [1, 1]} : vector<4x256xf32> to vector<4x16xf32>
    %c0_89 = arith.constant 0 : index
    %c181_90 = arith.constant 181 : index
    %144 = vector.load %arg8[%c0_89, %c181_90] : memref<4x512xf32, #tpu.memory_space<vmem>>, vector<4x16xf32>
    tpu.vector_store %arg8[%c0_89, %c181_90], %143 {strides = array<i32>} : memref<4x512xf32, #tpu.memory_space<vmem>>, vector<4x16xf32>,
    %145 = vector.extract_strided_slice %124 {offsets = [0, 160], sizes = [4, 16], strides = [1, 1]} : vector<4x256xf32> to vector<4x16xf32>
    %c0_91 = arith.constant 0 : index
    %c199_92 = arith.constant 199 : index
    %146 = vector.load %arg8[%c0_91, %c199_92] : memref<4x512xf32, #tpu.memory_space<vmem>>, vector<4x16xf32>
    tpu.vector_store %arg8[%c0_91, %c199_92], %145 {strides = array<i32>} : memref<4x512xf32, #tpu.memory_space<vmem>>, vector<4x16xf32>,
    %147 = vector.extract_strided_slice %124 {offsets = [0, 176], sizes = [4, 16], strides = [1, 1]} : vector<4x256xf32> to vector<4x16xf32>
    %c0_93 = arith.constant 0 : index
    %c217_94 = arith.constant 217 : index
    %148 = vector.load %arg8[%c0_93, %c217_94] : memref<4x512xf32, #tpu.memory_space<vmem>>, vector<4x16xf32>
    tpu.vector_store %arg8[%c0_93, %c217_94], %147 {strides = array<i32>} : memref<4x512xf32, #tpu.memory_space<vmem>>, vector<4x16xf32>,
    %149 = vector.extract_strided_slice %124 {offsets = [0, 192], sizes = [4, 16], strides = [1, 1]} : vector<4x256xf32> to vector<4x16xf32>
    %c0_95 = arith.constant 0 : index
    %c235_96 = arith.constant 235 : index
    %150 = vector.load %arg8[%c0_95, %c235_96] : memref<4x512xf32, #tpu.memory_space<vmem>>, vector<4x16xf32>
    tpu.vector_store %arg8[%c0_95, %c235_96], %149 {strides = array<i32>} : memref<4x512xf32, #tpu.memory_space<vmem>>, vector<4x16xf32>,
    %151 = vector.extract_strided_slice %124 {offsets = [0, 208], sizes = [4, 16], strides = [1, 1]} : vector<4x256xf32> to vector<4x16xf32>
    %c0_97 = arith.constant 0 : index
    %c253_98 = arith.constant 253 : index
    %152 = vector.load %arg8[%c0_97, %c253_98] : memref<4x512xf32, #tpu.memory_space<vmem>>, vector<4x16xf32>
    tpu.vector_store %arg8[%c0_97, %c253_98], %151 {strides = array<i32>} : memref<4x512xf32, #tpu.memory_space<vmem>>, vector<4x16xf32>,
    %153 = vector.extract_strided_slice %124 {offsets = [0, 224], sizes = [4, 16], strides = [1, 1]} : vector<4x256xf32> to vector<4x16xf32>
    %c0_99 = arith.constant 0 : index
    %c271_100 = arith.constant 271 : index
    %154 = vector.load %arg8[%c0_99, %c271_100] : memref<4x512xf32, #tpu.memory_space<vmem>>, vector<4x16xf32>
    tpu.vector_store %arg8[%c0_99, %c271_100], %153 {strides = array<i32>} : memref<4x512xf32, #tpu.memory_space<vmem>>, vector<4x16xf32>,
    %155 = vector.extract_strided_slice %124 {offsets = [0, 240], sizes = [4, 16], strides = [1, 1]} : vector<4x256xf32> to vector<4x16xf32>
    %c0_101 = arith.constant 0 : index
    %c289_102 = arith.constant 289 : index
    %156 = vector.load %arg8[%c0_101, %c289_102] : memref<4x512xf32, #tpu.memory_space<vmem>>, vector<4x16xf32>
    tpu.vector_store %arg8[%c0_101, %c289_102], %155 {strides = array<i32>} : memref<4x512xf32, #tpu.memory_space<vmem>>, vector<4x16xf32>,
    %c0_103 = arith.constant 0 : index
    %c0_104 = arith.constant 0 : index
    %157 = vector.load %arg8[%c0_103, %c0_104] : memref<4x512xf32, #tpu.memory_space<vmem>>, vector<4x512xf32>
    %158 = vector.extract_strided_slice %157 {offsets = [0, 0], sizes = [4, 384], strides = [1, 1]} : vector<4x512xf32> to vector<4x384xf32>
    %159 = vector.extract_strided_slice %157 {offsets = [0, 1], sizes = [4, 384], strides = [1, 1]} : vector<4x512xf32> to vector<4x384xf32>
    %160 = vector.extract_strided_slice %157 {offsets = [0, 2], sizes = [4, 384], strides = [1, 1]} : vector<4x512xf32> to vector<4x384xf32>
    %161 = vector.extract_strided_slice %157 {offsets = [0, 18], sizes = [4, 384], strides = [1, 1]} : vector<4x512xf32> to vector<4x384xf32>
    %162 = vector.extract_strided_slice %157 {offsets = [0, 19], sizes = [4, 384], strides = [1, 1]} : vector<4x512xf32> to vector<4x384xf32>
    %163 = vector.extract_strided_slice %157 {offsets = [0, 20], sizes = [4, 384], strides = [1, 1]} : vector<4x512xf32> to vector<4x384xf32>
    %164 = vector.extract_strided_slice %157 {offsets = [0, 36], sizes = [4, 384], strides = [1, 1]} : vector<4x512xf32> to vector<4x384xf32>
    %165 = vector.extract_strided_slice %157 {offsets = [0, 37], sizes = [4, 384], strides = [1, 1]} : vector<4x512xf32> to vector<4x384xf32>
    %166 = vector.extract_strided_slice %157 {offsets = [0, 38], sizes = [4, 384], strides = [1, 1]} : vector<4x512xf32> to vector<4x384xf32>
    %167 = tpu.concatenate %158, %159, %160, %161, %162, %163, %164, %165, %166 in 0 : vector<4x384xf32>, vector<4x384xf32>, vector<4x384xf32>, vector<4x384xf32>, vector<4x384xf32>, vector<4x384xf32>, vector<4x384xf32>, vector<4x384xf32>, vector<4x384xf32> -> vector<36x384xf32>
    %cst_105 = arith.constant dense<0.000000e+00> : vector<8x384xf32>
    %168 = tpu.matmul %9, %167, %cst_105 {dimension_numbers = #tpu.dot_dimension_numbers<[1], [0], [0], [1], [0, 0, 1, 1], [], []>} : vector<8x36xf32>, vector<36x384xf32>, vector<8x384xf32> -> vector<8x384xf32>
    %169 = vector.broadcast %10 : vector<8x1xf32> to vector<8x384xf32>
    %170 = arith.addf %168, %169 : vector<8x384xf32>
    %171 = vector.extract_strided_slice %170 {offsets = [0, 0], sizes = [8, 16], strides = [1, 1]} : vector<8x384xf32> to vector<8x16xf32>
    %c1_106 = arith.constant 1 : index
    %c0_107 = arith.constant 0 : index
    %c0_108 = arith.constant 0 : index
    %172 = vector.load %arg6[%c1_106, %c0_107, %c0_108] : memref<2x8x256xf32, #tpu.memory_space<vmem>>, vector<1x8x16xf32>
    %173 = vector.shape_cast %172 : vector<1x8x16xf32> to vector<8x16xf32>
    %174 = vector.shape_cast %171 : vector<8x16xf32> to vector<1x8x16xf32>
    tpu.vector_store %arg6[%c1_106, %c0_107, %c0_108], %174 {strides = array<i32>} : memref<2x8x256xf32, #tpu.memory_space<vmem>>, vector<1x8x16xf32>,
    %175 = vector.extract_strided_slice %170 {offsets = [0, 18], sizes = [8, 16], strides = [1, 1]} : vector<8x384xf32> to vector<8x16xf32>
    %c1_109 = arith.constant 1 : index
    %c0_110 = arith.constant 0 : index
    %c16_111 = arith.constant 16 : index
    %176 = vector.load %arg6[%c1_109, %c0_110, %c16_111] : memref<2x8x256xf32, #tpu.memory_space<vmem>>, vector<1x8x16xf32>
    %177 = vector.shape_cast %176 : vector<1x8x16xf32> to vector<8x16xf32>
    %178 = vector.shape_cast %175 : vector<8x16xf32> to vector<1x8x16xf32>
    tpu.vector_store %arg6[%c1_109, %c0_110, %c16_111], %178 {strides = array<i32>} : memref<2x8x256xf32, #tpu.memory_space<vmem>>, vector<1x8x16xf32>,
    %179 = vector.extract_strided_slice %170 {offsets = [0, 36], sizes = [8, 16], strides = [1, 1]} : vector<8x384xf32> to vector<8x16xf32>
    %c1_112 = arith.constant 1 : index
    %c0_113 = arith.constant 0 : index
    %c32_114 = arith.constant 32 : index
    %180 = vector.load %arg6[%c1_112, %c0_113, %c32_114] : memref<2x8x256xf32, #tpu.memory_space<vmem>>, vector<1x8x16xf32>
    %181 = vector.shape_cast %180 : vector<1x8x16xf32> to vector<8x16xf32>
    %182 = vector.shape_cast %179 : vector<8x16xf32> to vector<1x8x16xf32>
    tpu.vector_store %arg6[%c1_112, %c0_113, %c32_114], %182 {strides = array<i32>} : memref<2x8x256xf32, #tpu.memory_space<vmem>>, vector<1x8x16xf32>,
    %183 = vector.extract_strided_slice %170 {offsets = [0, 54], sizes = [8, 16], strides = [1, 1]} : vector<8x384xf32> to vector<8x16xf32>
    %c1_115 = arith.constant 1 : index
    %c0_116 = arith.constant 0 : index
    %c48_117 = arith.constant 48 : index
    %184 = vector.load %arg6[%c1_115, %c0_116, %c48_117] : memref<2x8x256xf32, #tpu.memory_space<vmem>>, vector<1x8x16xf32>
    %185 = vector.shape_cast %184 : vector<1x8x16xf32> to vector<8x16xf32>
    %186 = vector.shape_cast %183 : vector<8x16xf32> to vector<1x8x16xf32>
    tpu.vector_store %arg6[%c1_115, %c0_116, %c48_117], %186 {strides = array<i32>} : memref<2x8x256xf32, #tpu.memory_space<vmem>>, vector<1x8x16xf32>,
    %187 = vector.extract_strided_slice %170 {offsets = [0, 72], sizes = [8, 16], strides = [1, 1]} : vector<8x384xf32> to vector<8x16xf32>
    %c1_118 = arith.constant 1 : index
    %c0_119 = arith.constant 0 : index
    %c64_120 = arith.constant 64 : index
    %188 = vector.load %arg6[%c1_118, %c0_119, %c64_120] : memref<2x8x256xf32, #tpu.memory_space<vmem>>, vector<1x8x16xf32>
    %189 = vector.shape_cast %188 : vector<1x8x16xf32> to vector<8x16xf32>
    %190 = vector.shape_cast %187 : vector<8x16xf32> to vector<1x8x16xf32>
    tpu.vector_store %arg6[%c1_118, %c0_119, %c64_120], %190 {strides = array<i32>} : memref<2x8x256xf32, #tpu.memory_space<vmem>>, vector<1x8x16xf32>,
    %191 = vector.extract_strided_slice %170 {offsets = [0, 90], sizes = [8, 16], strides = [1, 1]} : vector<8x384xf32> to vector<8x16xf32>
    %c1_121 = arith.constant 1 : index
    %c0_122 = arith.constant 0 : index
    %c80_123 = arith.constant 80 : index
    %192 = vector.load %arg6[%c1_121, %c0_122, %c80_123] : memref<2x8x256xf32, #tpu.memory_space<vmem>>, vector<1x8x16xf32>
    %193 = vector.shape_cast %192 : vector<1x8x16xf32> to vector<8x16xf32>
    %194 = vector.shape_cast %191 : vector<8x16xf32> to vector<1x8x16xf32>
    tpu.vector_store %arg6[%c1_121, %c0_122, %c80_123], %194 {strides = array<i32>} : memref<2x8x256xf32, #tpu.memory_space<vmem>>, vector<1x8x16xf32>,
    %195 = vector.extract_strided_slice %170 {offsets = [0, 108], sizes = [8, 16], strides = [1, 1]} : vector<8x384xf32> to vector<8x16xf32>
    %c1_124 = arith.constant 1 : index
    %c0_125 = arith.constant 0 : index
    %c96_126 = arith.constant 96 : index
    %196 = vector.load %arg6[%c1_124, %c0_125, %c96_126] : memref<2x8x256xf32, #tpu.memory_space<vmem>>, vector<1x8x16xf32>
    %197 = vector.shape_cast %196 : vector<1x8x16xf32> to vector<8x16xf32>
    %198 = vector.shape_cast %195 : vector<8x16xf32> to vector<1x8x16xf32>
    tpu.vector_store %arg6[%c1_124, %c0_125, %c96_126], %198 {strides = array<i32>} : memref<2x8x256xf32, #tpu.memory_space<vmem>>, vector<1x8x16xf32>,
    %199 = vector.extract_strided_slice %170 {offsets = [0, 126], sizes = [8, 16], strides = [1, 1]} : vector<8x384xf32> to vector<8x16xf32>
    %c1_127 = arith.constant 1 : index
    %c0_128 = arith.constant 0 : index
    %c112_129 = arith.constant 112 : index
    %200 = vector.load %arg6[%c1_127, %c0_128, %c112_129] : memref<2x8x256xf32, #tpu.memory_space<vmem>>, vector<1x8x16xf32>
    %201 = vector.shape_cast %200 : vector<1x8x16xf32> to vector<8x16xf32>
    %202 = vector.shape_cast %199 : vector<8x16xf32> to vector<1x8x16xf32>
    tpu.vector_store %arg6[%c1_127, %c0_128, %c112_129], %202 {strides = array<i32>} : memref<2x8x256xf32, #tpu.memory_space<vmem>>, vector<1x8x16xf32>,
    %203 = vector.extract_strided_slice %170 {offsets = [0, 144], sizes = [8, 16], strides = [1, 1]} : vector<8x384xf32> to vector<8x16xf32>
    %c1_130 = arith.constant 1 : index
    %c0_131 = arith.constant 0 : index
    %c128_132 = arith.constant 128 : index
    %204 = vector.load %arg6[%c1_130, %c0_131, %c128_132] : memref<2x8x256xf32, #tpu.memory_space<vmem>>, vector<1x8x16xf32>
    %205 = vector.shape_cast %204 : vector<1x8x16xf32> to vector<8x16xf32>
    %206 = vector.shape_cast %203 : vector<8x16xf32> to vector<1x8x16xf32>
    tpu.vector_store %arg6[%c1_130, %c0_131, %c128_132], %206 {strides = array<i32>} : memref<2x8x256xf32, #tpu.memory_space<vmem>>, vector<1x8x16xf32>,
    %207 = vector.extract_strided_slice %170 {offsets = [0, 162], sizes = [8, 16], strides = [1, 1]} : vector<8x384xf32> to vector<8x16xf32>
    %c1_133 = arith.constant 1 : index
    %c0_134 = arith.constant 0 : index
    %c144_135 = arith.constant 144 : index
    %208 = vector.load %arg6[%c1_133, %c0_134, %c144_135] : memref<2x8x256xf32, #tpu.memory_space<vmem>>, vector<1x8x16xf32>
    %209 = vector.shape_cast %208 : vector<1x8x16xf32> to vector<8x16xf32>
    %210 = vector.shape_cast %207 : vector<8x16xf32> to vector<1x8x16xf32>
    tpu.vector_store %arg6[%c1_133, %c0_134, %c144_135], %210 {strides = array<i32>} : memref<2x8x256xf32, #tpu.memory_space<vmem>>, vector<1x8x16xf32>,
    %211 = vector.extract_strided_slice %170 {offsets = [0, 180], sizes = [8, 16], strides = [1, 1]} : vector<8x384xf32> to vector<8x16xf32>
    %c1_136 = arith.constant 1 : index
    %c0_137 = arith.constant 0 : index
    %c160_138 = arith.constant 160 : index
    %212 = vector.load %arg6[%c1_136, %c0_137, %c160_138] : memref<2x8x256xf32, #tpu.memory_space<vmem>>, vector<1x8x16xf32>
    %213 = vector.shape_cast %212 : vector<1x8x16xf32> to vector<8x16xf32>
    %214 = vector.shape_cast %211 : vector<8x16xf32> to vector<1x8x16xf32>
    tpu.vector_store %arg6[%c1_136, %c0_137, %c160_138], %214 {strides = array<i32>} : memref<2x8x256xf32, #tpu.memory_space<vmem>>, vector<1x8x16xf32>,
    %215 = vector.extract_strided_slice %170 {offsets = [0, 198], sizes = [8, 16], strides = [1, 1]} : vector<8x384xf32> to vector<8x16xf32>
    %c1_139 = arith.constant 1 : index
    %c0_140 = arith.constant 0 : index
    %c176_141 = arith.constant 176 : index
    %216 = vector.load %arg6[%c1_139, %c0_140, %c176_141] : memref<2x8x256xf32, #tpu.memory_space<vmem>>, vector<1x8x16xf32>
    %217 = vector.shape_cast %216 : vector<1x8x16xf32> to vector<8x16xf32>
    %218 = vector.shape_cast %215 : vector<8x16xf32> to vector<1x8x16xf32>
    tpu.vector_store %arg6[%c1_139, %c0_140, %c176_141], %218 {strides = array<i32>} : memref<2x8x256xf32, #tpu.memory_space<vmem>>, vector<1x8x16xf32>,
    %219 = vector.extract_strided_slice %170 {offsets = [0, 216], sizes = [8, 16], strides = [1, 1]} : vector<8x384xf32> to vector<8x16xf32>
    %c1_142 = arith.constant 1 : index
    %c0_143 = arith.constant 0 : index
    %c192_144 = arith.constant 192 : index
    %220 = vector.load %arg6[%c1_142, %c0_143, %c192_144] : memref<2x8x256xf32, #tpu.memory_space<vmem>>, vector<1x8x16xf32>
    %221 = vector.shape_cast %220 : vector<1x8x16xf32> to vector<8x16xf32>
    %222 = vector.shape_cast %219 : vector<8x16xf32> to vector<1x8x16xf32>
    tpu.vector_store %arg6[%c1_142, %c0_143, %c192_144], %222 {strides = array<i32>} : memref<2x8x256xf32, #tpu.memory_space<vmem>>, vector<1x8x16xf32>,
    %223 = vector.extract_strided_slice %170 {offsets = [0, 234], sizes = [8, 16], strides = [1, 1]} : vector<8x384xf32> to vector<8x16xf32>
    %c1_145 = arith.constant 1 : index
    %c0_146 = arith.constant 0 : index
    %c208_147 = arith.constant 208 : index
    %224 = vector.load %arg6[%c1_145, %c0_146, %c208_147] : memref<2x8x256xf32, #tpu.memory_space<vmem>>, vector<1x8x16xf32>
    %225 = vector.shape_cast %224 : vector<1x8x16xf32> to vector<8x16xf32>
    %226 = vector.shape_cast %223 : vector<8x16xf32> to vector<1x8x16xf32>
    tpu.vector_store %arg6[%c1_145, %c0_146, %c208_147], %226 {strides = array<i32>} : memref<2x8x256xf32, #tpu.memory_space<vmem>>, vector<1x8x16xf32>,
    %227 = vector.extract_strided_slice %170 {offsets = [0, 252], sizes = [8, 16], strides = [1, 1]} : vector<8x384xf32> to vector<8x16xf32>
    %c1_148 = arith.constant 1 : index
    %c0_149 = arith.constant 0 : index
    %c224_150 = arith.constant 224 : index
    %228 = vector.load %arg6[%c1_148, %c0_149, %c224_150] : memref<2x8x256xf32, #tpu.memory_space<vmem>>, vector<1x8x16xf32>
    %229 = vector.shape_cast %228 : vector<1x8x16xf32> to vector<8x16xf32>
    %230 = vector.shape_cast %227 : vector<8x16xf32> to vector<1x8x16xf32>
    tpu.vector_store %arg6[%c1_148, %c0_149, %c224_150], %230 {strides = array<i32>} : memref<2x8x256xf32, #tpu.memory_space<vmem>>, vector<1x8x16xf32>,
    %231 = vector.extract_strided_slice %170 {offsets = [0, 270], sizes = [8, 16], strides = [1, 1]} : vector<8x384xf32> to vector<8x16xf32>
    %c1_151 = arith.constant 1 : index
    %c0_152 = arith.constant 0 : index
    %c240_153 = arith.constant 240 : index
    %232 = vector.load %arg6[%c1_151, %c0_152, %c240_153] : memref<2x8x256xf32, #tpu.memory_space<vmem>>, vector<1x8x16xf32>
    %233 = vector.shape_cast %232 : vector<1x8x16xf32> to vector<8x16xf32>
    %234 = vector.shape_cast %231 : vector<8x16xf32> to vector<1x8x16xf32>
    tpu.vector_store %arg6[%c1_151, %c0_152, %c240_153], %234 {strides = array<i32>} : memref<2x8x256xf32, #tpu.memory_space<vmem>>, vector<1x8x16xf32>,
    return
  }
}

</mosaic_0001>

<bundles_post_ra>
// kernel: hybrid_forward.1
= control target key start
LH: loop header
LB: loop body
LE: loop exit
PB: predicated region body
PF: predicated region fallthrough
CT: control target
= control target key end

     0   :  { %s1215_s26 = smov 23   ;;  %s1216_s27 = smov 19   ;;  %v1217_v1 = vmov 0.0   ;;  %s1824_s0 = inlined_call_operand.vmem [shape: f32[2,4,256], index: 0, kind: input, shape index: {}]   ;;  %s1825_s1 = inlined_call_operand.vmem [shape: f32[8,36], index: 1, kind: input, shape index: {}]   ;;  %s1826_s2 = inlined_call_operand.vmem [shape: f32[8,1], index: 2, kind: input, shape index: {}]   ;;  %s1827_s3 = inlined_call_operand.vmem [shape: f32[16,32], index: 3, kind: input, shape index: {}]   ;;  %s1828_s4 = inlined_call_operand.vmem [shape: f32[32,64], index: 4, kind: input, shape index: {}]   ;;  %s1829_s5 = inlined_call_operand.vmem [shape: f32[1,64], index: 5, kind: input, shape index: {}]   ;;  %s1830_s6 = inlined_call_operand.vmem [shape: f32[2,8,256], index: 6, kind: output, shape index: {0}]   ;;  %s1831_s7 = inlined_call_operand.hbm [shape: f32[16,64], index: 7, kind: output, shape index: {1}]  }
   0x1   :  { %v128_v0 = vld [vmem:[%s1824_s0] sm:$0xff]  ;;  %124 = vst [vmem:[#allocation2] sm:$0xff] %v1217_v1  ;;  %125 = vst [vmem:[#allocation2 + $0x8] sm:$0xff] %v1217_v1  ;;  %455 = vmatprep.mubr.f32.mxu1 %v1217_v1  ;;  %s1218_s28 = smov 25   ;;  %s1219_s29 = smov 21  }
   0x2   :  { %140 = vrot.lane.b32.xlu1 %v128_v0, %s1215_s26  ;;  %130 = vrot.lane.b32.xlu0 %v128_v0, %s1216_s27 }
   0x6   :  { %145 = vrot.lane.b32.xlu1 %v128_v0, %s1218_s28  ;;  %135 = vrot.lane.b32.xlu0 %v128_v0, %s1219_s29 }
   0x7   :  { %13 = vsyncpa [#allocation4], 0  ;;  %s1220_s30 = smov 27   ;;  %s1221_s8 = smov 31   ;;  %v1071_v2 = vld [vmem:[%s1824_s0 + $0x8] sm:$0xff]  ;;  %vm133_vm0 = vcmask 281752  }
   0x8   :  { %s1222_s9 = smov 35   ;;  %s1223_s10 = smov 29   ;;  %vm138_vm1 = vcmask 429352   ;;  %vm143_vm2 = vcmask 576952   ;;  %vm148_vm3 = vcmask 724552   ;;  %vm153_vm4 = vcmask 872152  }
   0x9   :  { %s1224_s11 = smov 33   ;;  %s1225_s12 = smov 37   ;;  %vm166_vm5 = vcmask 1044472   ;;  %vm167_vm6 = vcmask 121860   ;;  %vm1838_vm7 = vcmask 252928   ;;  %vm1832_vm8 = vcmask 1019752  }
   0xa   :  { %150 = vrot.lane.b32.xlu1 %v128_v0, %s1220_s30  ;;  %160 = vrot.lane.b32.xlu0 %v128_v0, %s1221_s8  ;;  %s1226_s13 = smov 41   ;;  %s1227_s14 = smov 39   ;;  %vm1319_vm9 = vmor %vm167_vm6, %vm166_vm5  ;;  %vm1834_vm10 = vcmask 285696   ;;  %vm1833_vm11 = vcmask 265352   ;;  %vm1835_vm12 = vcmask 412952   ;;  %vm1836_vm13 = vcmask 302080  }
   0xb   :  { %s1228_s15 = smov 45   ;;  %s1229_s16 = smov 43   ;;  %vm1837_vm14 = vcmask 560552   ;;  %vm202_vm15 = vcmask 334848   ;;  %vm194_vm5 = vcmask 318464   ;;  %vm1839_vm6 = vcmask 708152  }
   0xc   :  { %s1230_s19 = smov 47   ;;  %s1231_s20 = smov 49   ;;  %v31_v10 = vld [vmem:[%s1828_s4 + $0x18] sm:$0xff] }
   0xd   :  { %s1232_s0 = smov 92   ;;  %s1233_s21 = smov 91   ;;  %1111 = vmatprep.subr.mxu0 %v31_v10 }
   0xe   :  { %175 = vrot.lane.b32.xlu1 %v128_v0, %s1222_s9  ;;  %155 = vrot.lane.b32.xlu0 %v128_v0, %s1223_s10  ;;  %s1234_s22 = smov 108   ;;  %s1235_s23 = smov 90  }
   0xf   :  { %s1236_s24 = smov 109   ;;  %s1237_s25 = smov 110   ;;  %1112 = vmatpush3.msra.mxu0 %v31_v10 }
  0x12   :  { %170 = vrot.lane.b32.xlu1 %v128_v0, %s1224_s11  ;;  %183 = vrot.lane.b32.xlu0 %v128_v0, %s1225_s12 }
  0x16   :  { %199 = vrot.lane.b32.xlu1 %v128_v0, %s1226_s13  ;;  %191 = vrot.lane.b32.xlu0 %v128_v0, %s1227_s14 }
  0x1a   :  { %215 = vrot.lane.b32.xlu1 %v128_v0, %s1228_s15  ;;  %207 = vrot.lane.b32.xlu0 %v128_v0, %s1229_s16 }
  0x1e   :  { %615 = vrot.lane.b32.xlu0 %v1071_v2, %s1216_s27  ;;  %619 = vrot.lane.b32.xlu1 %v1071_v2, %s1219_s29  ;;  %s1239_s27 = smov 127   ;;  %s1249_s29 = smov 112  }
  0x22   :  { %225 = vrot.lane.b32.xlu0 %v128_v0, %s1230_s19  ;;  %623 = vrot.lane.b32.xlu1 %v1071_v2, %s1215_s26  ;;  %s1238_s26 = smov 126  }
  0x26   :  { %231 = vrot.lane.b32.xlu0 %v128_v0, %s1231_s20  ;;  %627 = vrot.lane.b32.xlu1 %v1071_v2, %s1218_s28  ;;  %s1248_s28 = smov 114  }
  0x2a   :  { %639 = vrot.lane.b32.xlu0 %v1071_v2, %s1221_s8  ;;  %631 = vrot.lane.b32.xlu1 %v1071_v2, %s1220_s30  ;;  %s1250_s30 = smov 106   ;;  %s1251_s8 = smov 104  }
  0x2e   :  { %635 = vrot.lane.b32.xlu0 %v1071_v2, %s1223_s10  ;;  %649 = vrot.lane.b32.xlu1 %v1071_v2, %s1222_s9  ;;  %s1252_s9 = smov 102  }
  0x32   :  { %655 = vrot.lane.b32.xlu0 %v1071_v2, %s1225_s12  ;;  %645 = vrot.lane.b32.xlu1 %v1071_v2, %s1224_s11  ;;  %s1254_s12 = smov [#allocation3]  }
  0x36   :  { %661 = vrot.lane.b32.xlu0 %v1071_v2, %s1227_s14  ;;  %667 = vrot.lane.b32.xlu1 %v1071_v2, %s1226_s13  ;;  %s1050_s13 = sshll.u32 %s1254_s12, 4  ;;  %s1051_s13 = int_to_ptr.vmem [resolvable:$true] %s1050_s13 }
  0x37   :  { %s1193_s14 = scalar_lea.vmem %s1051_s13, 256  ;;  %p1198_p1 = scmp.lt.s32.totalorder %s1051_s13, %s1051_s13 }
  0x38   :  { %p1194_p0 = scmp.ne.s32.totalorder %s1051_s13, %s1193_s14  ;;  %p1199_p2 = scmp.lt.s32.totalorder %s1193_s14, %s1193_s14 }
  0x3a   :  { %673 = vrot.lane.b32.xlu0 %v1071_v2, %s1229_s16  ;;  %679 = vrot.lane.b32.xlu1 %v1071_v2, %s1228_s15  ;;  %p1200_p3 = por %p1199_p2, %p1198_p1 }
  0x3c   :  { %p1201_p4 = pnand %p1200_p3, %p1194_p0 }
  0x3e   :  { %685 = vrot.lane.b32.xlu0 %v1071_v2, %s1230_s19  ;;  %690 = vrot.lane.b32.xlu1 %v1071_v2, %s1231_s20  ;;  %s1242_s19 = smov 122  }
  0x74   :  { %v141_v3 = vpop.permute.xlu1 %140  ;;  %v131_v4 = vpop.permute.xlu0 %130 }
  0x75   :  { %134 = vst.msk [vmem:[#allocation2] sm:$0xf] %vm133_vm0, %v131_v4 }
  0x78   :  { %v146_v5 = vpop.permute.xlu1 %145  ;;  %v136_v6 = vpop.permute.xlu0 %135 }
  0x79   :  { %139 = vst.msk [vmem:[#allocation2] sm:$0xf] %vm138_vm1, %v136_v6 }
  0x7a   :  { %144 = vst.msk [vmem:[#allocation2] sm:$0xf] %vm143_vm2, %v141_v3 }
  0x7b   :  { %149 = vst.msk [vmem:[#allocation2] sm:$0xf] %vm148_vm3, %v146_v5 }
  0x7c   :  { %v151_v7 = vpop.permute.xlu1 %150  ;;  %v161_v8 = vpop.permute.xlu0 %160 }
  0x7d   :  { %154 = vst.msk [vmem:[#allocation2] sm:$0xf] %vm153_vm4, %v151_v7  ;;  %v162_v9 = vrot.slane %v161_v8, 4 }
  0x7f   :  { %v164_v13 = vsel %vm1838_vm7, %v162_v9, %v161_v8 }
  0x80   :  { %v176_v11 = vpop.permute.xlu1 %175  ;;  %v156_v12 = vpop.permute.xlu0 %155 }
  0x81   :  { %v177_v14 = vrot.slane %v176_v11, 4  ;;  %159 = vst.msk [vmem:[#allocation2] sm:$0xf] %vm1832_vm8, %v156_v12  ;;  %vm205_vm8 = vcmask 855752   ;;  %v29_v12 = vld [vmem:[%s1828_s4 + $0x8] sm:$0xff] }
  0x82   :  { %169 = vst.msk [vmem:[#allocation2] sm:$0xff] %vm1319_vm9, %v164_v13  ;;  %v28_v13 = vld [vmem:[%s1828_s4] sm:$0xff] }
  0x83   :  { %v179_v17 = vsel %vm1834_vm10, %v176_v11, %v177_v14  ;;  %vm222_vm10 = vcmask 105476   ;;  %v30_v11 = vld [vmem:[%s1828_s4 + $0x10] sm:$0xff] }
  0x84   :  { %v171_v15 = vpop.permute.xlu1 %170  ;;  %v184_v16 = vpop.permute.xlu0 %183  ;;  %1113 = vmatprep.subr.mxu0 %v30_v11 }
  0x85   :  { %174 = vst.msk [vmem:[#allocation2 + $0x4] sm:$0xf] %vm1833_vm11, %v171_v15  ;;  %v185_v18 = vrot.slane %v184_v16, 4  ;;  %vm221_vm11 = vcmask 1044456   ;;  %1114 = vmatpush3.msra.mxu0 %v30_v11  ;;  %v26_v15 = vld [vmem:[%s1827_s3] sm:$0xff] }
  0x86   :  { %182 = vst.msk [vmem:[#allocation2 + $0x4] sm:$0xf] %vm1835_vm12, %v179_v17  ;;  %vm218_vm12 = vcmask 367616   ;;  %vm1336_vm7 = vmor %vm222_vm10, %vm221_vm11  ;;  %vm235_vm10 = vcmask 396552   ;;  %vm1850_vm11 = vcmask 560552   ;;  %1115 = vmatprep.subr.mxu0 %v29_v12 }
  0x87   :  { %v187_v19 = vsel %vm1836_vm13, %v184_v16, %v185_v18  ;;  %vm210_vm13 = vcmask 351232   ;;  %1116 = vmatpush3.msra.mxu0 %v29_v12  ;;  %v27_v16 = vld [vmem:[%s1827_s3 + $0x8] sm:$0xff] }
  0x88   :  { %190 = vst.msk [vmem:[#allocation2 + $0x4] sm:$0xf] %vm1837_vm14, %v187_v19  ;;  %v200_v20 = vpop.permute.xlu1 %199  ;;  %v192_v21 = vpop.permute.xlu0 %191  ;;  %vm213_vm14 = vcmask 1003352   ;;  %1117 = vmatprep.subr.mxu0 %v28_v13 }
  0x89   :  { %v201_v22 = vrot.slane %v200_v20, 4  ;;  %v193_v23 = vrot.slane %v192_v21, 4  ;;  %1118 = vmatpush3.msra.mxu0 %v28_v13 }
  0x8a   :  { %1122 = vmatprep.subr.mxu0 %v1217_v1 }
  0x8b   :  { %v203_v24 = vsel %vm202_vm15, %v200_v20, %v201_v22  ;;  %v195_v25 = vsel %vm194_vm5, %v192_v21, %v193_v23 }
  0x8c   :  { %198 = vst.msk [vmem:[#allocation2 + $0x4] sm:$0xf] %vm1839_vm6, %v195_v25  ;;  %v216_v26 = vpop.permute.xlu1 %215  ;;  %v208_v27 = vpop.permute.xlu0 %207  ;;  %vm229_vm6 = vcmask 248952  }
  0x8d   :  { %v217_v28 = vrot.slane %v216_v26, 4  ;;  %206 = vst.msk [vmem:[#allocation2 + $0x4] sm:$0xf] %vm205_vm8, %v203_v24  ;;  %v209_v29 = vrot.slane %v208_v27, 4 }
  0x8f   :  { %v219_v31 = vsel %vm218_vm12, %v216_v26, %v217_v28  ;;  %v211_v32 = vsel %vm210_vm13, %v208_v27, %v209_v29  ;;  %v1241_v26 = vmov 0  }
  0x90   :  { %214 = vst.msk [vmem:[#allocation2 + $0x4] sm:$0xf] %vm213_vm14, %v211_v32  ;;  %v616_v33 = vpop.permute.xlu0 %615  ;;  %v620_v34 = vpop.permute.xlu1 %619  ;;  %1190 = vset.pattern.permute.xlu0 %v1241_v26 }
  0x91   :  { %224 = vst.msk [vmem:[#allocation2 + $0x4] sm:$0xff] %vm1336_vm7, %v219_v31  ;;  %v127_v31 = vld [vmem:[%s1826_s2] sm:$0xff] }
  0x94   :  { %v226_v35 = vpop.permute.xlu0 %225  ;;  %v624_v36 = vpop.permute.xlu1 %623 }
  0x95   :  { %v227_v37 = vrot.slane %v226_v35, 4 }
  0x97   :  { %230 = vst.msk [vmem:[#allocation2 + $0x8] sm:$0xf] %vm229_vm6, %v227_v37 }
  0x98   :  { %v1346_v38 = vld [vmem:[#allocation2] sm:$0xff]  ;;  %v232_v39 = vpop.permute.xlu0 %231  ;;  %v628_v40 = vpop.permute.xlu1 %627 }
  0x99   :  { %321 = vrot.lane.b32.xlu1 %v1346_v38, %s1232_s0  ;;  %338 = vrot.lane.b32.xlu0 %v1346_v38, %s1233_s21  ;;  %618 = vst.msk [vmem:[#allocation2] sm:$0xf] %vm133_vm0, %v616_v33  ;;  %v233_v41 = vrot.slane %v232_v39, 4  ;;  %v1364_v45 = vcombine.high %v1346_v38, %v1346_v38  ;;  %vm1844_vm0 = vcmask 252928   ;;  %v243_v54 = vcombine.low %v1346_v38, %v1346_v38 }
  0x9a   :  { %622 = vst.msk [vmem:[#allocation2] sm:$0xf] %vm138_vm1, %v620_v34  ;;  %vm1845_vm1 = vcmask 1019752  }
  0x9b   :  { %626 = vst.msk [vmem:[#allocation2] sm:$0xf] %vm143_vm2, %v624_v36  ;;  %vm1846_vm2 = vcmask 285696  }
  0x9c   :  { %236 = vst.msk [vmem:[#allocation2 + $0x8] sm:$0xf] %vm235_vm10, %v233_v41  ;;  %v640_v42 = vpop.permute.xlu0 %639  ;;  %v632_v43 = vpop.permute.xlu1 %631 }
  0x9d   :  { %630 = vst.msk [vmem:[#allocation2] sm:$0xf] %vm148_vm3, %v628_v40  ;;  %308 = vrot.lane.b32.xlu1 %v1346_v38, %s1234_s22  ;;  %351 = vrot.lane.b32.xlu0 %v1346_v38, %s1235_s23  ;;  %v641_v44 = vrot.slane %v640_v42, 4  ;;  %vm1847_vm3 = vcmask 265352  }
  0x9e   :  { %634 = vst.msk [vmem:[#allocation2] sm:$0xf] %vm153_vm4, %v632_v43  ;;  %vm1848_vm4 = vcmask 412952  }
  0x9f   :  { %v642_v46 = vsel %vm1844_vm0, %v641_v44, %v640_v42  ;;  %vm1851_vm0 = vcmask 708152  }
  0xa0   :  { %v636_v47 = vpop.permute.xlu0 %635  ;;  %v650_v48 = vpop.permute.xlu1 %649 }
  0xa1   :  { %291 = vrot.lane.b32.xlu1 %v1346_v38, %s1236_s24  ;;  %353 = vrot.lane.b32.xlu0 %v1364_v45, %s1235_s23  ;;  %638 = vst.msk [vmem:[#allocation2] sm:$0xf] %vm1845_vm1, %v636_v47  ;;  %v651_v49 = vrot.slane %v650_v48, 4  ;;  %vm284_vm1 = vcmask 900096  }
  0xa2   :  { %644 = vst.msk [vmem:[#allocation2] sm:$0xff] %vm1319_vm9, %v642_v46  ;;  %vm1849_vm9 = vcmask 302080  }
  0xa3   :  { %v652_v50 = vsel %vm1846_vm2, %v650_v48, %v651_v49  ;;  %v1388_v60 = vld [vmem:[#allocation2 + $0x8] sm:$0xff]  ;;  %vm253_vm2 = vcmask 1039360  }
  0xa4   :  { %v656_v51 = vpop.permute.xlu0 %655  ;;  %v646_v52 = vpop.permute.xlu1 %645  ;;  %v244_v14 = vcombine.low %v1388_v60, %v1388_v60  ;;  %v260_v17 = vcombine.high %v1388_v60, %v1388_v60 }
  0xa5   :  { %278 = vrot.lane.b32.xlu1 %v1346_v38, %s1237_s25  ;;  %323 = vrot.lane.b32.xlu0 %v1364_v45, %s1232_s0  ;;  %v657_v53 = vrot.slane %v656_v51, 4  ;;  %648 = vst.msk [vmem:[#allocation2 + $0x4] sm:$0xf] %vm1847_vm3, %v646_v52  ;;  %vm381_vm3 = vcmask 293888  }
  0xa6   :  { %654 = vst.msk [vmem:[#allocation2 + $0x4] sm:$0xf] %vm1848_vm4, %v652_v50  ;;  %vm121_vm4 = vcmask 523264  }
  0xa7   :  { %v658_v55 = vsel %vm1849_vm9, %v656_v51, %v657_v53  ;;  %vm532_vm9 = vcmask 130048  }
  0xa8   :  { %660 = vst.msk [vmem:[#allocation2 + $0x4] sm:$0xf] %vm1850_vm11, %v658_v55  ;;  %v662_v56 = vpop.permute.xlu0 %661  ;;  %v668_v57 = vpop.permute.xlu1 %667 }
  0xa9   :  { %261 = vrot.lane.b32.xlu1 %v1346_v38, %s1238_s26  ;;  %336 = vrot.lane.b32.xlu0 %v243_v54, %s1233_s21  ;;  %v663_v58 = vrot.slane %v662_v56, 4  ;;  %v669_v59 = vrot.slane %v668_v57, 4 }
  0xab   :  { %v664_v61 = vsel %vm194_vm5, %v662_v56, %v663_v58  ;;  %v670_v62 = vsel %vm202_vm15, %v668_v57, %v669_v59  ;;  %vm329_vm15 = vcmask 752640   ;;  %vm299_vm5 = vcmask 891904  }
  0xac   :  { %666 = vst.msk [vmem:[#allocation2 + $0x4] sm:$0xf] %vm1851_vm0, %v664_v61  ;;  %v674_v63 = vpop.permute.xlu0 %673  ;;  %v680_v0 = vpop.permute.xlu1 %679 }
  0xad   :  { %247 = vrot.lane.b32.xlu1 %v1346_v38, %s1239_s27  ;;  %295 = vrot.lane.b32.xlu0 %v1388_v60, %s1236_s24  ;;  %672 = vst.msk [vmem:[#allocation2 + $0x4] sm:$0xf] %vm205_vm8, %v670_v62  ;;  %v675_v2 = vrot.slane %v674_v63, 4  ;;  %v681_v3 = vrot.slane %v680_v0, 4  ;;  %vm1240_vm8 = vmmov 0  }
  0xaf   :  { %v676_v4 = vsel %vm210_vm13, %v674_v63, %v675_v2  ;;  %v682_v5 = vsel %vm218_vm12, %v680_v0, %v681_v3  ;;  %vm359_vm12 = vcmask 736256   ;;  %vm363_vm13 = vcmask 1043456  }
  0xb0   :  { %678 = vst.msk [vmem:[#allocation2 + $0x4] sm:$0xf] %vm213_vm14, %v676_v4  ;;  %v686_v6 = vpop.permute.xlu0 %685  ;;  %v691_v7 = vpop.permute.xlu1 %690  ;;  %vm344_vm14 = vcmask 744448  }
  0xb1   :  { %306 = vrot.lane.b32.xlu0 %v243_v54, %s1234_s22  ;;  %355 = vrot.lane.b32.xlu1 %v1388_v60, %s1235_s23  ;;  %684 = vst.msk [vmem:[#allocation2 + $0x4] sm:$0xff] %vm1336_vm7, %v682_v5  ;;  %v687_v8 = vrot.slane %v686_v6, 4  ;;  %v692_v9 = vrot.slane %v691_v7, 4  ;;  %vm39_vm7 = vcmask 261120  }
  0xb2   :  { %1119 = vmatprep.mubr.msk.f32.mxu0 %vm39_vm7, %v26_v15 }
  0xb3   :  { %689 = vst.msk [vmem:[#allocation2 + $0x8] sm:$0xf] %vm229_vm6, %v687_v8  ;;  %1120 = vmatmul.mubr.msk.f32.vlgmr.msra.gmra.mxu0 %vm39_vm7, %v27_v16  ;;  %vm314_vm6 = vcmask 883712  }
  0xb4   :  { %694 = vst.msk [vmem:[#allocation2 + $0x8] sm:$0xf] %vm235_vm10, %v692_v9  ;;  %1132 = vmatprep.mubr.msk.f32.mxu0 %vm1240_vm8, %v1217_v1  ;;  %vm269_vm10 = vcmask 1031168  }
  0xb5   :  { %265 = vrot.lane.b32.xlu0 %v1388_v60, %s1238_s26  ;;  %325 = vrot.lane.b32.xlu1 %v1388_v60, %s1232_s0 }
  0xb8   :  { %v1455_v18 = vld [vmem:[#allocation2] sm:$0xff] }
  0xb9   :  { %276 = vrot.lane.b32.xlu0 %v243_v54, %s1237_s25  ;;  %293 = vrot.lane.b32.xlu1 %v1364_v45, %s1236_s24  ;;  %v1471_v19 = vcombine.high %v1455_v18, %v1455_v18  ;;  %v701_v21 = vcombine.low %v1455_v18, %v1455_v18 }
  0xbb   :  { %v1481_v20 = vld [vmem:[#allocation2 + $0x8] sm:$0xff] }
  0xbc   :  { %v702_v22 = vcombine.low %v1481_v20, %v1481_v20  ;;  %v717_v23 = vcombine.high %v1481_v20, %v1481_v20 }
  0xbd   :  { %342 = vrot.lane.b32.xlu0 %v1388_v60, %s1233_s21  ;;  %263 = vrot.lane.b32.xlu1 %v1364_v45, %s1238_s26 }
  0xc1   :  { %312 = vrot.lane.b32.xlu0 %v1388_v60, %s1234_s22  ;;  %245 = vrot.lane.b32.xlu1 %v243_v54, %s1239_s27 }
  0xc5   :  { %251 = vrot.lane.b32.xlu0 %v1388_v60, %s1239_s27  ;;  %282 = vrot.lane.b32.xlu1 %v1388_v60, %s1237_s25 }
  0xc9   :  { %310 = vrot.lane.b32.xlu0 %v244_v14, %s1234_s22  ;;  %340 = vrot.lane.b32.xlu1 %v244_v14, %s1233_s21 }
  0xcd   :  { %280 = vrot.lane.b32.xlu0 %v244_v14, %s1237_s25  ;;  %327 = vrot.lane.b32.xlu1 %v260_v17, %s1232_s0 }
  0xd1   :  { %249 = vrot.lane.b32.xlu0 %v244_v14, %s1239_s27  ;;  %297 = vrot.lane.b32.xlu1 %v260_v17, %s1236_s24 }
  0xd5   :  { %357 = vrot.lane.b32.xlu0 %v260_v17, %s1235_s23  ;;  %790 = vrot.lane.b32.xlu1 %v1455_v18, %s1233_s21 }
  0xd9   :  { %267 = vrot.lane.b32.xlu0 %v260_v17, %s1238_s26  ;;  %802 = vrot.lane.b32.xlu1 %v1455_v18, %s1235_s23 }
  0xdd   :  { %774 = vrot.lane.b32.xlu0 %v1455_v18, %s1232_s0  ;;  %734 = vrot.lane.b32.xlu1 %v1455_v18, %s1237_s25 }
  0xe1   :  { %762 = vrot.lane.b32.xlu0 %v1455_v18, %s1234_s22  ;;  %804 = vrot.lane.b32.xlu1 %v1471_v19, %s1235_s23 }
  0xe5   :  { %746 = vrot.lane.b32.xlu0 %v1455_v18, %s1236_s24  ;;  %776 = vrot.lane.b32.xlu1 %v1471_v19, %s1232_s0 }
  0xe9   :  { %806 = vrot.lane.b32.xlu0 %v1481_v20, %s1235_s23  ;;  %788 = vrot.lane.b32.xlu1 %v701_v21, %s1233_s21 }
  0xed   :  { %778 = vrot.lane.b32.xlu0 %v1481_v20, %s1232_s0  ;;  %750 = vrot.lane.b32.xlu1 %v1481_v20, %s1236_s24 }
  0xf1   :  { %748 = vrot.lane.b32.xlu0 %v1471_v19, %s1236_s24  ;;  %760 = vrot.lane.b32.xlu1 %v701_v21, %s1234_s22 }
  0xf5   :  { %722 = vrot.lane.b32.xlu0 %v1481_v20, %s1238_s26  ;;  %720 = vrot.lane.b32.xlu1 %v1471_v19, %s1238_s26 }
  0xf9   :  { %792 = vrot.lane.b32.xlu0 %v702_v22, %s1233_s21  ;;  %764 = vrot.lane.b32.xlu1 %v702_v22, %s1234_s22 }
  0xfd   :  { %736 = vrot.lane.b32.xlu0 %v702_v22, %s1237_s25  ;;  %718 = vrot.lane.b32.xlu1 %v1455_v18, %s1238_s26 }
 0x101   :  { %732 = vrot.lane.b32.xlu0 %v701_v21, %s1237_s25  ;;  %705 = vrot.lane.b32.xlu1 %v1455_v18, %s1239_s27 }
 0x105   :  { %707 = vrot.lane.b32.xlu0 %v702_v22, %s1239_s27  ;;  %703 = vrot.lane.b32.xlu1 %v701_v21, %s1239_s27  ;;  %v1568_v22 = vld [vmem:[%s1825_s1] sm:$0xff] }
 0x109   :  { %808 = vrot.lane.b32.xlu0 %v717_v23, %s1235_s23  ;;  %780 = vrot.lane.b32.xlu1 %v717_v23, %s1232_s0  ;;  %s1243_s0 = smov 120   ;;  %s1245_s23 = smov 118  }
 0x10b   :  { %v322_v24 = vpop.permute.xlu1 %321  ;;  %v339_v25 = vpop.permute.xlu0 %338 }
 0x10d   :  { %794 = vrot.lane.b32.xlu0 %v1481_v20, %s1233_s21  ;;  %752 = vrot.lane.b32.xlu1 %v717_v23, %s1236_s24  ;;  %s1244_s21 = smov 124   ;;  %s1246_s24 = smov 100  }
 0x10f   :  { %v309_v27 = vpop.permute.xlu1 %308  ;;  %v352_v28 = vpop.permute.xlu0 %351 }
 0x111   :  { %766 = vrot.lane.b32.xlu0 %v1481_v20, %s1234_s22  ;;  %724 = vrot.lane.b32.xlu1 %v717_v23, %s1238_s26 }
 0x113   :  { %v292_v29 = vpop.permute.xlu1 %291  ;;  %v354_v30 = vpop.permute.xlu0 %353 }
 0x114   :  { %v360_v42 = vsel %vm359_vm12, %v352_v28, %v354_v30 }
 0x115   :  { %738 = vrot.lane.b32.xlu0 %v1481_v20, %s1237_s25  ;;  %709 = vrot.lane.b32.xlu1 %v1481_v20, %s1239_s27  ;;  %s1247_s27 = smov 116  }
 0x117   :  { %v279_v32 = vpop.permute.xlu1 %278  ;;  %v324_v33 = vpop.permute.xlu0 %323 }
 0x118   :  { %v330_v61 = vsel %vm329_vm15, %v322_v24, %v324_v33 }
 0x119   :  { %378 = vperm.xlu0 %1190, %v127_v31  }
 0x11b   :  { %v262_v34 = vpop.permute.xlu1 %261  ;;  %v337_v35 = vpop.permute.xlu0 %336 }
 0x11c   :  { %v345_v54 = vsel %vm344_vm14, %v337_v35, %v339_v25 }
 0x11d   :  { %v373_v2 = vsel %vm363_vm13, %v330_v61, %v345_v54 }
 0x11f   :  { %v248_v36 = vpop.permute.xlu1 %247  ;;  %v1528_v37 = vpop.permute.xlu0 %295 }
 0x123   :  { %v307_v39 = vpop.permute.xlu0 %306  ;;  %v1530_v40 = vpop.permute.xlu1 %355 }
 0x124   :  { %v361_v41 = vsel %vm359_vm12, %v354_v30, %v1530_v40  ;;  %v315_v3 = vsel %vm314_vm6, %v307_v39, %v309_v27 }
 0x125   :  { %1066 = vmatprep.subr.msk.mxu1 %vm363_vm13, %v361_v41 }
 0x126   :  { %1067 = vmatpush1.msk.msra.mxu1 %vm363_vm13, %v360_v42 }
 0x127   :  { %v1537_v43 = vpop.permute.xlu0 %265  ;;  %v326_v44 = vpop.permute.xlu1 %325 }
 0x128   :  { %v331_v57 = vsel %vm329_vm15, %v324_v33, %v326_v44 }
 0x12b   :  { %v277_v46 = vpop.permute.xlu0 %276  ;;  %v294_v47 = vpop.permute.xlu1 %293 }
 0x12c   :  { %v300_v62 = vsel %vm299_vm5, %v292_v29, %v294_v47  ;;  %v301_v0 = vsel %vm299_vm5, %v294_v47, %v1528_v37  ;;  %v285_v11 = vsel %vm284_vm1, %v277_v46, %v279_v32 }
 0x12d   :  { %v370_v10 = vsel %vm363_vm13, %v300_v62, %v315_v3 }
 0x12f   :  { %v343_v48 = vpop.permute.xlu0 %342  ;;  %v264_v49 = vpop.permute.xlu1 %263 }
 0x130   :  { %v270_v4 = vsel %vm269_vm10, %v262_v34, %v264_v49  ;;  %v271_v8 = vsel %vm269_vm10, %v264_v49, %v1537_v43 }
 0x131   :  { %v367_v13 = vsel %vm363_vm13, %v270_v4, %v285_v11 }
 0x133   :  { %v313_v50 = vpop.permute.xlu0 %312  ;;  %v246_v51 = vpop.permute.xlu1 %245 }
 0x134   :  { %v254_v14 = vsel %vm253_vm2, %v246_v51, %v248_v36 }
 0x135   :  { %v364_v23 = vsel %vm363_vm13, %v1346_v38, %v254_v14 }
 0x137   :  { %v1539_v52 = vpop.permute.xlu0 %251  ;;  %v283_v53 = vpop.permute.xlu1 %282 }
 0x13b   :  { %v311_v55 = vpop.permute.xlu0 %310  ;;  %v341_v56 = vpop.permute.xlu1 %340 }
 0x13c   :  { %v316_v58 = vsel %vm314_vm6, %v309_v27, %v311_v55  ;;  %v346_v59 = vsel %vm344_vm14, %v339_v25, %v341_v56  ;;  %v317_v29 = vsel %vm314_vm6, %v311_v55, %v313_v50 }
 0x13d   :  { %v374_v63 = vsel %vm363_vm13, %v331_v57, %v346_v59  ;;  %v371_v7 = vsel %vm363_vm13, %v301_v0, %v316_v58 }
 0x13e   :  { %415 = vmatprep.subr.mxu1 %v374_v63 }
 0x13f   :  { %v281_v5 = vpop.permute.xlu0 %280  ;;  %416 = vmatpush1.msra.mxu1 %v373_v2  ;;  %v328_v6 = vpop.permute.xlu1 %327 }
 0x140   :  { %v286_v9 = vsel %vm284_vm1, %v279_v32, %v281_v5  ;;  %417 = vmatprep.subr.mxu1 %v371_v7  ;;  %v332_v24 = vsel %vm329_vm15, %v326_v44, %v328_v6  ;;  %v287_v32 = vsel %vm284_vm1, %v281_v5, %v283_v53 }
 0x141   :  { %418 = vmatpush1.msra.mxu1 %v370_v10  ;;  %v368_v12 = vsel %vm363_vm13, %v271_v8, %v286_v9 }
 0x142   :  { %419 = vmatprep.subr.mxu1 %v368_v12 }
 0x143   :  { %v250_v15 = vpop.permute.xlu0 %249  ;;  %420 = vmatpush1.msra.mxu1 %v367_v13  ;;  %v298_v16 = vpop.permute.xlu1 %297 }
 0x144   :  { %v255_v17 = vsel %vm253_vm2, %v248_v36, %v250_v15  ;;  %v302_v28 = vsel %vm299_vm5, %v1528_v37, %v298_v16  ;;  %v256_v35 = vsel %vm253_vm2, %v250_v15, %v1539_v52 }
 0x145   :  { %v365_v21 = vsel %vm363_vm13, %v1364_v45, %v255_v17  ;;  %v347_v45 = vsel %vm344_vm14, %v341_v56, %v343_v48  ;;  %v372_v34 = vsel %vm363_vm13, %v302_v28, %v317_v29 }
 0x146   :  { %421 = vmatprep.subr.mxu1 %v365_v21  ;;  %v375_v38 = vsel %vm363_vm13, %v332_v24, %v347_v45 }
 0x147   :  { %v358_v25 = vpop.permute.xlu0 %357  ;;  %422 = vmatpush1.msra.mxu1 %v364_v23  ;;  %v791_v26 = vpop.permute.xlu1 %790 }
 0x148   :  { %v362_v27 = vsel %vm359_vm12, %v1530_v40, %v358_v25  ;;  %1068 = vmatmul.mubr.msk.f32.vlgmr.msra.gmra.mxu1 %vm381_vm3, %v1568_v22  ;;  %v366_v40 = vsel %vm363_vm13, %v1388_v60, %v256_v35 }
 0x149   :  { %1123 = vmatpush3.msk.msra.mxu0 %vm363_vm13, %v362_v27  ;;  %895 = vmatprep.mubr.f32.mxu1 %v1217_v1 }
 0x14a   :  { %1124 = vmatprep.subr.mxu0 %v1217_v1 }
 0x14b   :  { %v268_v30 = vpop.permute.xlu0 %267  ;;  %v803_v31 = vpop.permute.xlu1 %802  ;;  %1125 = vmatpush3.msra.mxu0 %v375_v38 }
 0x14c   :  { %v272_v33 = vsel %vm269_vm10, %v1537_v43, %v268_v30  ;;  %1126 = vmatprep.subr.mxu0 %v1217_v1 }
 0x14d   :  { %1127 = vmatpush3.msra.mxu0 %v372_v34  ;;  %v369_v36 = vsel %vm363_vm13, %v272_v33, %v287_v32 }
 0x14e   :  { %1128 = vmatprep.subr.mxu0 %v1217_v1 }
 0x14f   :  { %v775_v37 = vpop.permute.xlu0 %774  ;;  %v735_v39 = vpop.permute.xlu1 %734  ;;  %1129 = vmatpush3.msra.mxu0 %v369_v36 }
 0x150   :  { %1130 = vmatprep.subr.mxu0 %v1217_v1 }
 0x151   :  { %1131 = vmatpush3.msra.mxu0 %v366_v40 }
 0x152   :  { %1133 = vmatmul.mubr.msk.f32.vlgmr.msra.gmra.mxu0 %vm381_vm3, %v1568_v22  ;;  %1135 = vmatprep.subr.mxu0 %v1217_v1 }
 0x153   :  { %v763_v41 = vpop.permute.xlu0 %762  ;;  %v805_v42 = vpop.permute.xlu1 %804  ;;  %1145 = vmatprep.mubr.msk.f32.mxu0 %vm1240_vm8, %v1217_v1 }
 0x154   :  { %v810_v49 = vsel %vm359_vm12, %v803_v31, %v805_v42 }
 0x157   :  { %v747_v43 = vpop.permute.xlu0 %746  ;;  %v777_v44 = vpop.permute.xlu1 %776 }
 0x158   :  { %v782_v62 = vsel %vm329_vm15, %v775_v37, %v777_v44 }
 0x15b   :  { %v807_v46 = vpop.permute.xlu0 %806  ;;  %v789_v47 = vpop.permute.xlu1 %788 }
 0x15c   :  { %v811_v48 = vsel %vm359_vm12, %v805_v42, %v807_v46  ;;  %v796_v55 = vsel %vm344_vm14, %v789_v47, %v791_v26 }
 0x15d   :  { %1072 = vmatprep.subr.msk.mxu1 %vm363_vm13, %v811_v48  ;;  %v822_v4 = vsel %vm363_vm13, %v782_v62, %v796_v55 }
 0x15e   :  { %1073 = vmatpush1.msk.msra.mxu1 %vm363_vm13, %v810_v49 }
 0x15f   :  { %v779_v60 = vpop.permute.xlu0 %778  ;;  %v751_v50 = vpop.permute.xlu1 %750 }
 0x160   :  { %v783_v58 = vsel %vm329_vm15, %v777_v44, %v779_v60 }
 0x163   :  { %v749_v51 = vpop.permute.xlu0 %748  ;;  %v761_v52 = vpop.permute.xlu1 %760 }
 0x164   :  { %v754_v63 = vsel %vm299_vm5, %v747_v43, %v749_v51  ;;  %v768_v0 = vsel %vm314_vm6, %v761_v52, %v763_v41  ;;  %v755_v3 = vsel %vm299_vm5, %v749_v51, %v751_v50 }
 0x165   :  { %v819_v10 = vsel %vm363_vm13, %v754_v63, %v768_v0 }
 0x167   :  { %v1606_v53 = vpop.permute.xlu0 %722  ;;  %v721_v54 = vpop.permute.xlu1 %720 }
 0x168   :  { %v727_v8 = vsel %vm269_vm10, %v721_v54, %v1606_v53 }
 0x16b   :  { %v793_v56 = vpop.permute.xlu0 %792  ;;  %v765_v57 = vpop.permute.xlu1 %764 }
 0x16c   :  { %v797_v59 = vsel %vm344_vm14, %v791_v26, %v793_v56  ;;  %v769_v61 = vsel %vm314_vm6, %v763_v41, %v765_v57 }
 0x16d   :  { %v823_v2 = vsel %vm363_vm13, %v783_v58, %v797_v59  ;;  %v820_v7 = vsel %vm363_vm13, %v755_v3, %v769_v61 }
 0x16e   :  { %855 = vmatprep.subr.mxu1 %v823_v2 }
 0x16f   :  { %v737_v5 = vpop.permute.xlu0 %736  ;;  %856 = vmatpush1.msra.mxu1 %v822_v4  ;;  %v719_v6 = vpop.permute.xlu1 %718 }
 0x170   :  { %v741_v9 = vsel %vm284_vm1, %v735_v39, %v737_v5  ;;  %857 = vmatprep.subr.mxu1 %v820_v7  ;;  %v726_v14 = vsel %vm269_vm10, %v719_v6, %v721_v54 }
 0x171   :  { %858 = vmatpush1.msra.mxu1 %v819_v10  ;;  %v817_v11 = vsel %vm363_vm13, %v727_v8, %v741_v9 }
 0x172   :  { %859 = vmatprep.subr.mxu1 %v817_v11 }
 0x173   :  { %v733_v12 = vpop.permute.xlu0 %732  ;;  %v706_v13 = vpop.permute.xlu1 %705 }
 0x174   :  { %v740_v15 = vsel %vm284_vm1, %v733_v12, %v735_v39  ;;  %v1121_v44 = vpop.f32.mrf.mxu0 }
 0x175   :  { %v816_v16 = vsel %vm363_vm13, %v726_v14, %v740_v15 }
 0x176   :  { %860 = vmatpush1.msra.mxu1 %v816_v16  ;;  %v112_v48 = vpop.f32.mrf.mxu0 }
 0x177   :  { %v708_v17 = vpop.permute.xlu0 %707  ;;  %v704_v21 = vpop.permute.xlu1 %703 }
 0x178   :  { %v712_v23 = vsel %vm253_vm2, %v706_v13, %v708_v17  ;;  %v711_v24 = vsel %vm253_vm2, %v704_v21, %v706_v13 }
 0x179   :  { %v814_v25 = vsel %vm363_vm13, %v1471_v19, %v712_v23  ;;  %v813_v26 = vsel %vm363_vm13, %v1455_v18, %v711_v24 }
 0x17a   :  { %861 = vmatprep.subr.mxu1 %v814_v25 }
 0x17b   :  { %v809_v27 = vpop.permute.xlu0 %808  ;;  %862 = vmatpush1.msra.mxu1 %v813_v26  ;;  %v781_v45 = vpop.permute.xlu1 %780 }
 0x17c   :  { %v812_v28 = vsel %vm359_vm12, %v807_v46, %v809_v27  ;;  %1074 = vmatmul.mubr.msk.f32.vlgmr.msra.gmra.mxu1 %vm381_vm3, %v1568_v22  ;;  %v784_v19 = vsel %vm329_vm15, %v779_v60, %v781_v45  ;;  %v1063_v46 = vld [vmem:[%s1829_s5] ss:$0 sm:$0xff] }
 0x17d   :  { %1136 = vmatpush3.msk.msra.mxu0 %vm363_vm13, %v812_v28  ;;  %v118_v47 = vadd.f32 %v1121_v44, %v1063_v46  ;;  %v113_v49 = vadd.f32 %v1063_v46, %v112_v48 }
 0x17e   :  { %1137 = vmatprep.subr.mxu0 %v1217_v1 }
 0x17f   :  { %v795_v38 = vpop.permute.xlu0 %794  ;;  %v753_v29 = vpop.permute.xlu1 %752  ;;  %123 = vst.msk [vmem:[#allocation3 + $0x8] sm:$0xff] %vm121_vm4, %v118_v47  ;;  %122 = vst.msk [vmem:[#allocation3] sm:$0xff] %vm121_vm4, %v113_v49 }
 0x180   :  { %v798_v30 = vsel %vm344_vm14, %v793_v56, %v795_v38  ;;  %v756_v33 = vsel %vm299_vm5, %v751_v50, %v753_v29 }
 0x181   :  { %v824_v18 = vsel %vm363_vm13, %v784_v19, %v798_v30 }
 0x182   :  { %1138 = vmatpush3.msra.mxu0 %v824_v18 }
 0x183   :  { %v767_v31 = vpop.permute.xlu0 %766  ;;  %v725_v32 = vpop.permute.xlu1 %724  ;;  %1139 = vmatprep.subr.mxu0 %v1217_v1 }
 0x184   :  { %v770_v34 = vsel %vm314_vm6, %v765_v57, %v767_v31  ;;  %v728_v39 = vsel %vm269_vm10, %v1606_v53, %v725_v32 }
 0x185   :  { %v821_v35 = vsel %vm363_vm13, %v756_v33, %v770_v34 }
 0x186   :  { %1140 = vmatpush3.msra.mxu0 %v821_v35 }
 0x187   :  { %v739_v36 = vpop.permute.xlu0 %738  ;;  %v710_v37 = vpop.permute.xlu1 %709  ;;  %1141 = vmatprep.subr.mxu0 %v1217_v1 }
 0x188   :  { %v742_v40 = vsel %vm284_vm1, %v737_v5, %v739_v36  ;;  %v713_v41 = vsel %vm253_vm2, %v708_v17, %v710_v37 }
 0x189   :  { %v818_v42 = vsel %vm363_vm13, %v728_v39, %v742_v40  ;;  %v815_v43 = vsel %vm363_vm13, %v1481_v20, %v713_v41 }
 0x18a   :  { %1142 = vmatpush3.msra.mxu0 %v818_v42 }
 0x18b   :  { %1143 = vmatprep.subr.mxu0 %v1217_v1 }
 0x18c   :  { %1144 = vmatpush3.msra.mxu0 %v815_v43 }
 0x18d   :  { %1146 = vmatmul.mubr.msk.f32.vlgmr.msra.gmra.mxu0 %vm381_vm3, %v1568_v22 }
 0x194   :  { %v379_v60 = vpop.permute.xlu0 %378 }
 0x208   :  { %v457_v1 = vpop.f32.mrf.mxu1 }
 0x209   :  { %v458_v50 = vadd.f32 %v457_v1, %v379_v60 }
 0x20a   :  { %v459_v51 = vpop.f32.mrf.mxu1 }
 0x20b   :  { %545 = vrot.lane.b32.xlu0 %v458_v50, %s1242_s19  ;;  %535 = vrot.lane.b32.xlu1 %v458_v50, %s1238_s26  ;;  %533 = vst.msk [vmem:[%s1830_s6] sm:$0xff] %vm532_vm9, %v458_v50  ;;  %v460_v53 = vadd.f32 %v459_v51, %v379_v60 }
 0x20f   :  { %550 = vrot.lane.b32.xlu0 %v458_v50, %s1243_s0  ;;  %540 = vrot.lane.b32.xlu1 %v458_v50, %s1244_s21 }
 0x212   :  { %v528_v20 = vpop.f32.mrf.mxu0 }
 0x213   :  { %v529_v22 = vadd.f32 %v528_v20, %v379_v60  ;;  %555 = vrot.lane.b32.xlu0 %v458_v50, %s1245_s23 }
 0x214   :  { %v1134_v52 = vpop.f32.mrf.mxu0 }
 0x215   :  { %602 = vrot.lane.b32.xlu1 %v529_v22, %s1246_s24 }
 0x217   :  { %560 = vrot.lane.b32.xlu0 %v458_v50, %s1247_s27 }
 0x219   :  { %566 = vrot.lane.b32.xlu1 %v458_v50, %s1248_s28 }
 0x21b   :  { %575 = vrot.lane.b32.xlu0 %v460_v53, %s1249_s29 }
 0x21d   :  { %583 = vrot.lane.b32.xlu1 %v460_v53, %s1234_s22 }
 0x21f   :  { %579 = vrot.lane.b32.xlu0 %v460_v53, %s1237_s25 }
 0x221   :  { %587 = vrot.lane.b32.xlu1 %v460_v53, %s1250_s30 }
 0x223   :  { %600 = vrot.lane.b32.xlu0 %v460_v53, %s1246_s24 }
 0x225   :  { %591 = vrot.lane.b32.xlu1 %v460_v53, %s1251_s8 }
 0x227   :  { %568 = vrot.lane.b32.xlu0 %v460_v53, %s1248_s28 }
 0x229   :  { %595 = vrot.lane.b32.xlu1 %v460_v53, %s1252_s9 }
 0x23c   :  { %v897_v54 = vpop.f32.mrf.mxu1 }
 0x23d   :  { %v898_v55 = vadd.f32 %v897_v54, %v379_v60 }
 0x23e   :  { %v899_v57 = vpop.f32.mrf.mxu1 }
 0x23f   :  { %979 = vrot.lane.b32.xlu0 %v898_v55, %s1244_s21  ;;  %975 = vrot.lane.b32.xlu1 %v898_v55, %s1238_s26  ;;  %1077 = vst.msk [vmem:[%s1830_s6 + $0x10] sm:$0xff] %vm532_vm9, %v898_v55  ;;  %v900_v61 = vadd.f32 %v899_v57, %v379_v60  ;;  %s1253_s26 = smov 98  }
 0x243   :  { %983 = vrot.lane.b32.xlu0 %v898_v55, %s1242_s19 }
 0x247   :  { %987 = vrot.lane.b32.xlu0 %v898_v55, %s1243_s0 }
 0x24b   :  { %991 = vrot.lane.b32.xlu0 %v898_v55, %s1245_s23 }
 0x24d   :  { %v968_v56 = vpop.f32.mrf.mxu0 }
 0x24e   :  { %v969_v58 = vadd.f32 %v968_v56, %v379_v60 }
 0x24f   :  { %1000 = vrot.lane.b32.xlu0 %v898_v55, %s1248_s28  ;;  %v1147_v59 = vpop.f32.mrf.mxu0 }
 0x250   :  { %1034 = vrot.lane.b32.xlu1 %v969_v58, %s1246_s24 }
 0x253   :  { %1011 = vrot.lane.b32.xlu0 %v900_v61, %s1237_s25 }
 0x254   :  { %995 = vrot.lane.b32.xlu1 %v898_v55, %s1247_s27 }
 0x257   :  { %1032 = vrot.lane.b32.xlu0 %v900_v61, %s1246_s24 }
 0x258   :  { %1007 = vrot.lane.b32.xlu1 %v900_v61, %s1249_s29 }
 0x25b   :  { %608 = vrot.lane.b32.xlu0 %v529_v22, %s1253_s26 }
 0x25c   :  { %1015 = vrot.lane.b32.xlu1 %v900_v61, %s1234_s22 }
 0x260   :  { %1019 = vrot.lane.b32.xlu1 %v900_v61, %s1250_s30 }
 0x264   :  { %1023 = vrot.lane.b32.xlu1 %v900_v61, %s1251_s8 }
 0x265   :  { %1204 = shalt.err (!%p1201_p4)
}
 0x266   :  { %s1255_s25 = smov 128   ;;  %s1256_s15 = smov 8   ;;  %vm538_vm11 = vcmask 261248   ;;  %vm543_vm0 = vcmask 392448   ;;  %vm548_vm7 = vcmask 523648   ;;  %vm553_vm8 = vcmask 654848  }
 0x267   :  { %1056 = dma.vmem_to_hbm [thread:$0]  %s1051_s13, 256, %s1831_s7, [#allocation4], %s1255_s25, %s1255_s25, %s1256_s15   ;;  %vm558_vm12 = vcmask 786048   ;;  %vm563_vm13 = vcmask 917248   ;;  %vm604_vm14 = vcmask 818176   ;;  %vm570_vm15 = vcmask 932864  }
 0x268   :  { %1027 = vrot.lane.b32.xlu1 %v900_v61, %s1252_s9  ;;  %vm573_vm5 = vcmask 1048448  }
 0x26c   :  { %1002 = vrot.lane.b32.xlu1 %v900_v61, %s1248_s28 }
 0x270   :  { %1039 = vrot.lane.b32.xlu1 %v969_v58, %s1253_s26 }
 0x27d   :  { %v546_v62 = vpop.permute.xlu0 %545  ;;  %v536_v63 = vpop.permute.xlu1 %535 }
 0x27e   :  { %539 = vst.msk [vmem:[%s1830_s6] sm:$0xff] %vm538_vm11, %v536_v63 }
 0x281   :  { %v551_v0 = vpop.permute.xlu0 %550  ;;  %v541_v2 = vpop.permute.xlu1 %540 }
 0x282   :  { %544 = vst.msk [vmem:[%s1830_s6] sm:$0xff] %vm543_vm0, %v541_v2 }
 0x283   :  { %549 = vst.msk [vmem:[%s1830_s6] sm:$0xff] %vm548_vm7, %v546_v62 }
 0x284   :  { %554 = vst.msk [vmem:[%s1830_s6] sm:$0xff] %vm553_vm8, %v551_v0 }
 0x285   :  { %v556_v3 = vpop.permute.xlu0 %555 }
 0x286   :  { %559 = vst.msk [vmem:[%s1830_s6] sm:$0xff] %vm558_vm12, %v556_v3 }
 0x287   :  { %v603_v4 = vpop.permute.xlu1 %602 }
 0x289   :  { %v561_v5 = vpop.permute.xlu0 %560 }
 0x28a   :  { %564 = vst.msk [vmem:[%s1830_s6] sm:$0xff] %vm563_vm13, %v561_v5 }
 0x28b   :  { %v567_v6 = vpop.permute.xlu1 %566 }
 0x28d   :  { %v576_v7 = vpop.permute.xlu0 %575 }
 0x28e   :  { %578 = vst.msk [vmem:[%s1830_s6 + $0x8] sm:$0xff] %vm532_vm9, %v576_v7 }
 0x28f   :  { %v584_v8 = vpop.permute.xlu1 %583 }
 0x291   :  { %v580_v9 = vpop.permute.xlu0 %579 }
 0x292   :  { %582 = vst.msk [vmem:[%s1830_s6 + $0x8] sm:$0xff] %vm538_vm11, %v580_v9 }
 0x293   :  { %586 = vst.msk [vmem:[%s1830_s6 + $0x8] sm:$0xff] %vm543_vm0, %v584_v8  ;;  %v588_v10 = vpop.permute.xlu1 %587 }
 0x294   :  { %590 = vst.msk [vmem:[%s1830_s6 + $0x8] sm:$0xff] %vm548_vm7, %v588_v10 }
 0x295   :  { %v601_v11 = vpop.permute.xlu0 %600 }
 0x296   :  { %v605_v14 = vsel %vm604_vm14, %v601_v11, %v603_v4 }
 0x297   :  { %v592_v12 = vpop.permute.xlu1 %591 }
 0x298   :  { %594 = vst.msk [vmem:[%s1830_s6 + $0x8] sm:$0xff] %vm553_vm8, %v592_v12 }
 0x299   :  { %v569_v13 = vpop.permute.xlu0 %568 }
 0x29a   :  { %v571_v15 = vsel %vm570_vm15, %v567_v6, %v569_v13 }
 0x29b   :  { %574 = vst.msk [vmem:[%s1830_s6] sm:$0xff] %vm573_vm5, %v571_v15  ;;  %v596_v16 = vpop.permute.xlu1 %595 }
 0x29c   :  { %598 = vst.msk [vmem:[%s1830_s6 + $0x8] sm:$0xff] %vm558_vm12, %v596_v16 }
 0x29d   :  { %607 = vst.msk [vmem:[%s1830_s6 + $0x8] sm:$0xff] %vm563_vm13, %v605_v14 }
 0x2b1   :  { %v980_v17 = vpop.permute.xlu0 %979  ;;  %v976_v21 = vpop.permute.xlu1 %975 }
 0x2b2   :  { %1078 = vst.msk [vmem:[%s1830_s6 + $0x10] sm:$0xff] %vm538_vm11, %v976_v21 }
 0x2b3   :  { %1079 = vst.msk [vmem:[%s1830_s6 + $0x10] sm:$0xff] %vm543_vm0, %v980_v17 }
 0x2b5   :  { %v984_v23 = vpop.permute.xlu0 %983 }
 0x2b6   :  { %1080 = vst.msk [vmem:[%s1830_s6 + $0x10] sm:$0xff] %vm548_vm7, %v984_v23 }
 0x2b9   :  { %v988_v24 = vpop.permute.xlu0 %987 }
 0x2ba   :  { %1081 = vst.msk [vmem:[%s1830_s6 + $0x10] sm:$0xff] %vm553_vm8, %v988_v24 }
 0x2bd   :  { %v992_v25 = vpop.permute.xlu0 %991 }
 0x2be   :  { %1082 = vst.msk [vmem:[%s1830_s6 + $0x10] sm:$0xff] %vm558_vm12, %v992_v25 }
 0x2c1   :  { %v1001_v26 = vpop.permute.xlu0 %1000 }
 0x2c2   :  { %v1035_v27 = vpop.permute.xlu1 %1034 }
 0x2c5   :  { %v1012_v45 = vpop.permute.xlu0 %1011 }
 0x2c6   :  { %v996_v28 = vpop.permute.xlu1 %995 }
 0x2c7   :  { %1083 = vst.msk [vmem:[%s1830_s6 + $0x10] sm:$0xff] %vm563_vm13, %v996_v28 }
 0x2c9   :  { %v1033_v38 = vpop.permute.xlu0 %1032 }
 0x2ca   :  { %v1008_v29 = vpop.permute.xlu1 %1007  ;;  %v1036_v33 = vsel %vm604_vm14, %v1033_v38, %v1035_v27 }
 0x2cb   :  { %1085 = vst.msk [vmem:[%s1830_s6 + $0x18] sm:$0xff] %vm532_vm9, %v1008_v29 }
 0x2cc   :  { %1086 = vst.msk [vmem:[%s1830_s6 + $0x18] sm:$0xff] %vm538_vm11, %v1012_v45 }
 0x2cd   :  { %v609_v19 = vpop.permute.xlu0 %608 }
 0x2ce   :  { %611 = vst.msk [vmem:[%s1830_s6 + $0x8] sm:$0xff] %vm573_vm5, %v609_v19  ;;  %v1016_v30 = vpop.permute.xlu1 %1015 }
 0x2cf   :  { %1087 = vst.msk [vmem:[%s1830_s6 + $0x18] sm:$0xff] %vm543_vm0, %v1016_v30 }
 0x2d2   :  { %v1020_v18 = vpop.permute.xlu1 %1019 }
 0x2d3   :  { %1088 = vst.msk [vmem:[%s1830_s6 + $0x18] sm:$0xff] %vm548_vm7, %v1020_v18 }
 0x2d6   :  { %v1024_v31 = vpop.permute.xlu1 %1023 }
 0x2d7   :  { %1089 = vst.msk [vmem:[%s1830_s6 + $0x18] sm:$0xff] %vm553_vm8, %v1024_v31 }
 0x2da   :  { %v1028_v32 = vpop.permute.xlu1 %1027 }
 0x2db   :  { %1090 = vst.msk [vmem:[%s1830_s6 + $0x18] sm:$0xff] %vm558_vm12, %v1028_v32 }
 0x2dc   :  { %1091 = vst.msk [vmem:[%s1830_s6 + $0x18] sm:$0xff] %vm563_vm13, %v1036_v33 }
 0x2de   :  { %v1003_v34 = vpop.permute.xlu1 %1002 }
 0x2df   :  { %v1004_v35 = vsel %vm570_vm15, %v1001_v26, %v1003_v34 }
 0x2e0   :  { %1084 = vst.msk [vmem:[%s1830_s6 + $0x10] sm:$0xff] %vm573_vm5, %v1004_v35 }
 0x2e2   :  { %v1040_v36 = vpop.permute.xlu1 %1039 }
 0x2e3   :  { %1092 = vst.msk [vmem:[%s1830_s6 + $0x18] sm:$0xff] %vm573_vm5, %v1040_v36 }
 0x2e4   :  { %1213 = dma.done.wait [#allocation4], 256  }
 0x2e5   :  { %1214 = vsyncadd [#allocation4], 4294967040 }
 0x2e6   :  { %1062 = vsyncpa [#allocation4], 1 }

</bundles_post_ra>
